<compile_context>
chip_gen: v7x
topology: tpu7x:2x2x1
jax: 0.10.0
libtpu: 0.0.40
codegen_flags: <defaults>
</compile_context>

<pallas_src>
import numpy as np
import jax
import jax.numpy as jnp
from jax.experimental import pallas as pl
from jax.experimental.pallas import tpu as pltpu

LANE = 128
SUBLANE = 8


def _round_up(v, m):
    return (v + m - 1) // m * m


def gru_encoder_kernel(len_ref, gx_ref, whh_ref, bhh_ref, out_ref, hid_ref):
    """One (batch-block, time-chunk) grid cell.

    len_ref : (Bb, 1) int32   unpadded sequence lengths
    gx_ref  : (Tc, Bb, 3*Hp)  hoisted input projection, per-gate lane-padded
    whh_ref : (Hp, 3*Hp)      concatenated recurrent weight [W_r^T | W_z^T | W_n^T]
    bhh_ref : (1, 3*Hp)       concatenated recurrent bias
    out_ref : (Tc, Bb, Hp)    padded per-timestep outputs (zero past length)
    hid_ref : (Bb, Hp)        hidden state; resident across the time-chunk axis
    """
    Tc = gx_ref.shape[0]
    Hp = hid_ref.shape[1]
    tc = pl.program_id(1)
    t0 = tc * Tc

    @pl.when(tc == 0)
    def _():
        hid_ref[...] = jnp.zeros_like(hid_ref)

    # Hoisted loads — not re-issued every timestep.
    whh = whh_ref[...]
    bhh = bhh_ref[...]
    lens = len_ref[...]                                   # (Bb, 1) int32

    def step(t, h_prev):
        # ONE fused recurrent dot (r|z|n) -> single MXU push per step.
        gh = jnp.dot(h_prev.astype(whh.dtype), whh,
                     preferred_element_type=jnp.float32) + bhh        # (Bb, 3*Hp)
        gx_t = gx_ref[t]                                              # (Bb, 3*Hp)
        # PyTorch GRU gate order r, z, n; b_hh applied to the recurrent n-term.
        rz = jax.nn.sigmoid(gx_t[:, :2 * Hp].astype(jnp.float32) + gh[:, :2 * Hp])
        r = rz[:, :Hp]
        z = rz[:, Hp:]
        n = jnp.tanh(gx_t[:, 2 * Hp:].astype(jnp.float32) + r * gh[:, 2 * Hp:])
        h_new = (1.0 - z) * n + z * h_prev
        # pack_padded semantics: freeze h past length; zero-fill padded outputs.
        m = lens > (t0 + t)                                           # (Bb, 1) bool
        out_ref[t] = jnp.where(m, h_new, 0.0).astype(out_ref.dtype)   # lane-dense store
        return jnp.where(m, h_new, h_prev)

    h0 = hid_ref[...].astype(jnp.float32)                  # carry from previous chunk
    h_final = jax.lax.fori_loop(0, Tc, step, h0, unroll=min(Tc, 8))
    hid_ref[...] = h_final.astype(hid_ref.dtype)


def encoder_forward(x, x_sz, params, *, batch_block=None, time_block=None,
                    matmul_dtype=jnp.float32):
    """x: (B, T) int32 token ids; x_sz: (B,) int32 lengths. Returns (output, hidden).

    output: (B, Tm, H) with Tm = max(x_sz) (pad_packed truncation), zero past length.
    hidden: (1, B, H) final GRU hidden state.
    """
    emb_table = params["embedding"]                        # (V, E)
    w_ih = params["weight_ih_l0"]                          # (3H, E)
    w_hh = params["weight_hh_l0"]                          # (3H, H)
    b_ih = params["bias_ih_l0"]                            # (3H,)
    b_hh = params["bias_hh_l0"]                            # (3H,)

    B, T = x.shape
    H = w_hh.shape[1]

    # pad_packed_sequence truncates to the longest sequence in the batch.
    # (Requires concrete lengths — same restriction as torch's pack_padded_sequence.)
    Tm = int(np.max(np.asarray(x_sz)))

    Hp = _round_up(H, LANE)                                # lane-dense gate width
    Bp = _round_up(B, SUBLANE)                             # sublane-aligned batch

    # ---- XLA glue: embedding gather + hoisted input projection ----------------
    emb = jnp.take(emb_table, x[:, :Tm], axis=0).astype(jnp.float32)   # (B, Tm, E)
    emb_tm = jnp.transpose(emb, (1, 0, 2))                             # (Tm, B, E)
    w_ih_f = jnp.asarray(w_ih, jnp.float32)
    b_ih_f = jnp.asarray(b_ih, jnp.float32)
    gx = jnp.einsum("tbe,ge->tbg", emb_tm, w_ih_f) + b_ih_f            # (Tm, B, 3H)

    # Per-gate lane padding: (Tm, B, 3H) -> (Tm, B, 3*Hp), gate g at [g*Hp : g*Hp+H].
    gx_pad = jnp.pad(gx.reshape(Tm, B, 3, H),
                     ((0, 0), (0, 0), (0, 0), (0, Hp - H))).reshape(Tm, B, 3 * Hp)

    # Concatenated recurrent weight (Hp, 3*Hp): [i, g*Hp + j] = w_hh[g*H + j, i].
    whh_g = jnp.asarray(w_hh, jnp.float32).reshape(3, H, H)            # (gate, out, in)
    whh_t = jnp.transpose(whh_g, (0, 2, 1))                            # (gate, in, out)
    whh_cat = jnp.transpose(jnp.pad(whh_t, ((0, 0), (0, Hp - H), (0, Hp - H))),
                            (1, 0, 2)).reshape(Hp, 3 * Hp)
    bhh_cat = jnp.pad(jnp.asarray(b_hh, jnp.float32).reshape(3, H),
                      ((0, 0), (0, Hp - H))).reshape(1, 3 * Hp)

    # Optional bf16 slabs for the MXU operands (gate math stays f32 in-kernel).
    gx_pad = gx_pad.astype(matmul_dtype)
    whh_cat = whh_cat.astype(matmul_dtype)

    # ---- block sizes -----------------------------------------------------------
    Bb = Bp if batch_block is None else batch_block        # don't split batch on 1-TC chips
    assert Bp % Bb == 0 and Bb % SUBLANE == 0, "batch block must divide padded B, multiple of 8"
    nb = Bp // Bb

    if time_block is None:
        # Keep one gx chunk around ~2 MiB so the resident footprint stays far
        # below the v7x 64 MiB VMEM while still amortizing per-step overheads.
        per_t_bytes = Bb * 4 * Hp * np.dtype(np.float32).itemsize
        Tc = int(max(1, min(Tm, (2 << 20) // max(per_t_bytes, 1))))
    else:
        Tc = int(max(1, min(time_block, Tm)))
    Tp = _round_up(Tm, Tc)
    ntc = Tp // Tc

    # Pad batch / time (padded rows get length 0 -> frozen h, zero outputs).
    gx_full = jnp.pad(gx_pad, ((0, Tp - Tm), (0, Bp - B), (0, 0)))
    lengths = jnp.pad(jnp.asarray(x_sz, jnp.int32), (0, Bp - B))[:, None]   # (Bp, 1)

    # VMEM budget sized to the actual (double-buffered) block footprint.
    itemsize = jnp.dtype(matmul_dtype).itemsize
    vmem_bytes = 2 * (Tc * Bb * 3 * Hp * itemsize            # gx chunk
                      + Tc * Bb * Hp * 4                     # out chunk
                      + Hp * 3 * Hp * itemsize               # W_hh
                      + 3 * Hp * 4 + Bb * 4 + Bb * Hp * 4)   # b_hh, lens, hid
    vmem_limit = int(min(max(int(vmem_bytes * 1.5) + (1 << 20), 4 << 20), 64 << 20))

    gx_spec = pl.BlockSpec((Tc, Bb, 3 * Hp), lambda i, t: (t, i, 0))
    out_spec = pl.BlockSpec((Tc, Bb, Hp), lambda i, t: (t, i, 0))

    out_tm, hidden = pl.pallas_call(
        gru_encoder_kernel,
        out_shape=(
            jax.ShapeDtypeStruct((Tp, Bp, Hp), jnp.float32),
            jax.ShapeDtypeStruct((Bp, Hp), jnp.float32),
        ),
        grid_spec=pltpu.PrefetchScalarGridSpec(
            num_scalar_prefetch=0,
            grid=(nb, ntc),
            in_specs=[
                pl.BlockSpec((Bb, 1), lambda i, t: (i, 0)),          # lengths
                gx_spec,                                             # gx (all gates)
                pl.BlockSpec((Hp, 3 * Hp), lambda i, t: (0, 0)),     # W_hh concat
                pl.BlockSpec((1, 3 * Hp), lambda i, t: (0, 0)),      # b_hh concat
            ],
            out_specs=[
                out_spec,                                            # padded outputs
                pl.BlockSpec((Bb, Hp), lambda i, t: (i, 0)),         # hidden (resident over t)
            ],
        ),
        compiler_params=pltpu.CompilerParams(
            dimension_semantics=("parallel", "arbitrary"),           # batch ∥, time serial
            vmem_limit_bytes=vmem_limit,
        ),
    )(lengths, gx_full, whh_cat, bhh_cat)

    # Strip lane / batch / time padding; torch layout: output (B, Tm, H), hidden (1, B, H).
    output = jnp.transpose(out_tm[:Tm, :B, :H], (1, 0, 2))
    return output, hidden[:B, :H][None, :, :]


def reference_forward(x, x_sz, params):
    """Pure-JAX reference (lax.scan GRU) mirroring PyTorch semantics."""
    emb_table = params["embedding"]
    w_ih, w_hh = params["weight_ih_l0"], params["weight_hh_l0"]
    b_ih, b_hh = params["bias_ih_l0"], params["bias_hh_l0"]
    B, T = x.shape
    H = w_hh.shape[1]
    emb = jnp.transpose(jnp.take(emb_table, x, axis=0), (1, 0, 2))   # (T, B, E)
    mask = (jnp.arange(T)[:, None] < x_sz[None, :]).astype(jnp.float32)[..., None]

    def step(h, inp):
        x_t, m = inp
        gx = x_t @ w_ih.T + b_ih
        gh = h @ w_hh.T + b_hh
        r = jax.nn.sigmoid(gx[:, :H] + gh[:, :H])
        z = jax.nn.sigmoid(gx[:, H:2 * H] + gh[:, H:2 * H])
        n = jnp.tanh(gx[:, 2 * H:] + r * gh[:, 2 * H:])
        h_new = (1.0 - z) * n + z * h
        h_upd = m * h_new + (1.0 - m) * h
        return h_upd, m * h_new

    h0 = jnp.zeros((B, H), jnp.float32)
    h_fin, outs = jax.lax.scan(step, h0, (emb, mask))
    max_len = int(np.max(np.asarray(x_sz)))
    return jnp.transpose(outs[:max_len], (1, 0, 2)), h_fin[None]


if __name__ == "__main__":
    # Encoder hyperparameters (rnn_type='gru', layers=1, bidirectional=False).
    V, E, H = 16, 32, 32     # input_dim, embed_dim, hidden_dim
    B, T = 8, 8              # batch, padded sequence length

    key = jax.random.PRNGKey(0)
    k_emb, k_wih, k_whh, k_bih, k_bhh, k_x = jax.random.split(key, 6)
    params = {
        "embedding":    0.1 * jax.random.normal(k_emb, (V, E), jnp.float32),
        "weight_ih_l0": 0.1 * jax.random.normal(k_wih, (3 * H, E), jnp.float32),
        "weight_hh_l0": 0.1 * jax.random.normal(k_whh, (3 * H, H), jnp.float32),
        "bias_ih_l0":   0.1 * jax.random.normal(k_bih, (3 * H,), jnp.float32),
        "bias_hh_l0":   0.1 * jax.random.normal(k_bhh, (3 * H,), jnp.float32),
    }

    x = jax.random.randint(k_x, (B, T), 0, V, dtype=jnp.int32)
    x_sz = jnp.array([8, 5, 3, 8, 7, 2, 6, 4], dtype=jnp.int32)   # unpadded lengths

    ref_out, ref_hid = reference_forward(x, x_sz, params)

    # Default config: single time chunk resident in VMEM.
    output, hidden = encoder_forward(x, x_sz, params)
    output = jax.block_until_ready(output)
    hidden = jax.block_until_ready(hidden)
    np.testing.assert_allclose(np.asarray(output), np.asarray(ref_out), rtol=1e-5, atol=1e-5)
    np.testing.assert_allclose(np.asarray(hidden), np.asarray(ref_hid), rtol=1e-5, atol=1e-5)

    # Exercise the time-streamed path (2 chunks, hidden carried across chunks).
    output2, hidden2 = encoder_forward(x, x_sz, params, time_block=4)
    output2 = jax.block_until_ready(output2)
    hidden2 = jax.block_until_ready(hidden2)
    np.testing.assert_allclose(np.asarray(output2), np.asarray(ref_out), rtol=1e-5, atol=1e-5)
    np.testing.assert_allclose(np.asarray(hidden2), np.asarray(ref_hid), rtol=1e-5, atol=1e-5)

    print("KERNEL_OK")
</pallas_src>

<mosaic_0001>
module attributes {stable_mosaic.version = 11 : i64} {
  func.func @gru_encoder_kernel(%arg0: i32, %arg1: i32, %arg2: memref<8x1xi32, #tpu.memory_space<vmem>>, %arg3: memref<8x8x384xf32, #tpu.memory_space<vmem>>, %arg4: memref<128x384xf32, #tpu.memory_space<vmem>>, %arg5: memref<1x384xf32, #tpu.memory_space<vmem>>, %arg6: memref<8x8x128xf32, #tpu.memory_space<vmem>>, %arg7: memref<8x128xf32, #tpu.memory_space<vmem>>) attributes {dimension_semantics = [#tpu.dimension_semantics<parallel>, #tpu.dimension_semantics<arbitrary>], iteration_bounds = array<i64: 1, 1>, scalar_prefetch = 0 : i64, scratch_operands = 0 : i64, tpu.core_type = #tpu.core_type<tc>, window_params = [{transform_indices = @transform_0, window_bounds = array<i64: 8, 1>}, {transform_indices = @transform_1, window_bounds = array<i64: 8, 8, 384>}, {pipeline_mode = #tpu.pipeline_mode<synchronous>, transform_indices = @transform_2, window_bounds = array<i64: 128, 384>}, {pipeline_mode = #tpu.pipeline_mode<synchronous>, transform_indices = @transform_3, window_bounds = array<i64: 1, 384>}, {transform_indices = @transform_4, window_bounds = array<i64: 8, 8, 128>}, {transform_indices = @transform_5, window_bounds = array<i64: 8, 128>}]} {
    %c8_i32 = arith.constant 8 : i32
    %0 = arith.muli %arg1, %c8_i32 : i32
    %c0_i32 = arith.constant 0 : i32
    %1 = arith.cmpi eq, %arg1, %c0_i32 : i32
    %2 = arith.extui %1 : i1 to i32
    %c0_i32_0 = arith.constant 0 : i32
    %3 = arith.cmpi ne, %2, %c0_i32_0 : i32
    scf.if %3 {
      %cst_75 = arith.constant 0.000000e+00 : f32
      %329 = vector.broadcast %cst_75 : f32 to vector<8x128xf32>
      %c0_76 = arith.constant 0 : index
      %c0_77 = arith.constant 0 : index
      %330 = vector.load %arg7[%c0_76, %c0_77] : memref<8x128xf32, #tpu.memory_space<vmem>>, vector<8x128xf32>
      tpu.vector_store %arg7[%c0_76, %c0_77], %329 {strides = array<i32>} : memref<8x128xf32, #tpu.memory_space<vmem>>, vector<8x128xf32>,
    } else {
    }
    %c0 = arith.constant 0 : index
    %c0_1 = arith.constant 0 : index
    %4 = vector.load %arg4[%c0, %c0_1] : memref<128x384xf32, #tpu.memory_space<vmem>>, vector<128x384xf32>
    %c0_2 = arith.constant 0 : index
    %c0_3 = arith.constant 0 : index
    %5 = vector.load %arg5[%c0_2, %c0_3] : memref<1x384xf32, #tpu.memory_space<vmem>>, vector<1x384xf32>
    %c0_4 = arith.constant 0 : index
    %c0_5 = arith.constant 0 : index
    %6 = vector.load %arg2[%c0_4, %c0_5] : memref<8x1xi32, #tpu.memory_space<vmem>>, vector<8x1xi32>
    %c0_6 = arith.constant 0 : index
    %c0_7 = arith.constant 0 : index
    %7 = vector.load %arg7[%c0_6, %c0_7] : memref<8x128xf32, #tpu.memory_space<vmem>>, vector<8x128xf32>
    %c0_i32_8 = arith.constant 0 : i32
    %cst = arith.constant dense<0.000000e+00> : vector<8x384xf32>
    %8 = tpu.matmul %7, %4, %cst {dimension_numbers = #tpu.dot_dimension_numbers<[1], [0], [0], [1], [0, 0, 1, 1], [], []>} : vector<8x128xf32>, vector<128x384xf32>, vector<8x384xf32> -> vector<8x384xf32>
    %9 = vector.broadcast %5 : vector<1x384xf32> to vector<8x384xf32>
    %10 = arith.addf %8, %9 : vector<8x384xf32>
    %11 = arith.index_cast %c0_i32_8 : i32 to index
    %c0_9 = arith.constant 0 : index
    %c0_10 = arith.constant 0 : index
    %12 = vector.load %arg3[%11, %c0_9, %c0_10] : memref<8x8x384xf32, #tpu.memory_space<vmem>>, vector<1x8x384xf32>
    %13 = vector.shape_cast %12 : vector<1x8x384xf32> to vector<8x384xf32>
    %14 = vector.extract_strided_slice %13 {offsets = [0, 0], sizes = [8, 256], strides = [1, 1]} : vector<8x384xf32> to vector<8x256xf32>
    %15 = vector.extract_strided_slice %10 {offsets = [0, 0], sizes = [8, 256], strides = [1, 1]} : vector<8x384xf32> to vector<8x256xf32>
    %16 = arith.addf %14, %15 : vector<8x256xf32>
    %17 = arith.negf %16 : vector<8x256xf32>
    %18 = math.exp %17 : vector<8x256xf32>
    %cst_11 = arith.constant 1.000000e+00 : f32
    %19 = vector.broadcast %cst_11 : f32 to vector<8x256xf32>
    %20 = arith.addf %19, %18 : vector<8x256xf32>
    %21 = arith.divf %19, %20 : vector<8x256xf32>
    %22 = vector.extract_strided_slice %21 {offsets = [0, 0], sizes = [8, 128], strides = [1, 1]} : vector<8x256xf32> to vector<8x128xf32>
    %23 = vector.extract_strided_slice %21 {offsets = [0, 128], sizes = [8, 128], strides = [1, 1]} : vector<8x256xf32> to vector<8x128xf32>
    %24 = vector.extract_strided_slice %13 {offsets = [0, 256], sizes = [8, 128], strides = [1, 1]} : vector<8x384xf32> to vector<8x128xf32>
    %25 = vector.extract_strided_slice %10 {offsets = [0, 256], sizes = [8, 128], strides = [1, 1]} : vector<8x384xf32> to vector<8x128xf32>
    %26 = arith.mulf %22, %25 : vector<8x128xf32>
    %27 = arith.addf %24, %26 : vector<8x128xf32>
    %28 = math.tanh %27 : vector<8x128xf32>
    %cst_12 = arith.constant 1.000000e+00 : f32
    %29 = vector.broadcast %cst_12 : f32 to vector<8x128xf32>
    %30 = arith.subf %29, %23 : vector<8x128xf32>
    %31 = arith.mulf %30, %28 : vector<8x128xf32>
    %32 = arith.mulf %23, %7 : vector<8x128xf32>
    %33 = arith.addf %31, %32 : vector<8x128xf32>
    %34 = arith.addi %0, %c0_i32_8 : i32
    %35 = vector.broadcast %34 : i32 to vector<8x1xi32>
    %36 = arith.cmpi sgt, %6, %35 : vector<8x1xi32>
    %cst_13 = arith.constant 0.000000e+00 : f32
    %37 = vector.shape_cast %36 : vector<8x1xi1> to vector<8x1xi1>
    %38 = vector.broadcast %37 : vector<8x1xi1> to vector<8x128xi1>
    %39 = vector.broadcast %cst_13 : f32 to vector<8x128xf32>
    %40 = arith.select %38, %33, %39 : vector<8x128xi1>, vector<8x128xf32>
    %41 = arith.index_cast %c0_i32_8 : i32 to index
    %c0_14 = arith.constant 0 : index
    %c0_15 = arith.constant 0 : index
    %42 = vector.load %arg6[%41, %c0_14, %c0_15] : memref<8x8x128xf32, #tpu.memory_space<vmem>>, vector<1x8x128xf32>
    %43 = vector.shape_cast %42 : vector<1x8x128xf32> to vector<8x128xf32>
    %44 = vector.shape_cast %40 : vector<8x128xf32> to vector<1x8x128xf32>
    tpu.vector_store %arg6[%41, %c0_14, %c0_15], %44 {strides = array<i32>} : memref<8x8x128xf32, #tpu.memory_space<vmem>>, vector<1x8x128xf32>,
    %45 = vector.shape_cast %36 : vector<8x1xi1> to vector<8x1xi1>
    %46 = vector.broadcast %45 : vector<8x1xi1> to vector<8x128xi1>
    %47 = arith.select %46, %33, %7 : vector<8x128xi1>, vector<8x128xf32>
    %c1_i32 = arith.constant 1 : i32
    %cst_16 = arith.constant dense<0.000000e+00> : vector<8x384xf32>
    %48 = tpu.matmul %47, %4, %cst_16 {dimension_numbers = #tpu.dot_dimension_numbers<[1], [0], [0], [1], [0, 0, 1, 1], [], []>} : vector<8x128xf32>, vector<128x384xf32>, vector<8x384xf32> -> vector<8x384xf32>
    %49 = vector.broadcast %5 : vector<1x384xf32> to vector<8x384xf32>
    %50 = arith.addf %48, %49 : vector<8x384xf32>
    %51 = arith.index_cast %c1_i32 : i32 to index
    %c0_17 = arith.constant 0 : index
    %c0_18 = arith.constant 0 : index
    %52 = vector.load %arg3[%51, %c0_17, %c0_18] : memref<8x8x384xf32, #tpu.memory_space<vmem>>, vector<1x8x384xf32>
    %53 = vector.shape_cast %52 : vector<1x8x384xf32> to vector<8x384xf32>
    %54 = vector.extract_strided_slice %53 {offsets = [0, 0], sizes = [8, 256], strides = [1, 1]} : vector<8x384xf32> to vector<8x256xf32>
    %55 = vector.extract_strided_slice %50 {offsets = [0, 0], sizes = [8, 256], strides = [1, 1]} : vector<8x384xf32> to vector<8x256xf32>
    %56 = arith.addf %54, %55 : vector<8x256xf32>
    %57 = arith.negf %56 : vector<8x256xf32>
    %58 = math.exp %57 : vector<8x256xf32>
    %cst_19 = arith.constant 1.000000e+00 : f32
    %59 = vector.broadcast %cst_19 : f32 to vector<8x256xf32>
    %60 = arith.addf %59, %58 : vector<8x256xf32>
    %61 = arith.divf %59, %60 : vector<8x256xf32>
    %62 = vector.extract_strided_slice %61 {offsets = [0, 0], sizes = [8, 128], strides = [1, 1]} : vector<8x256xf32> to vector<8x128xf32>
    %63 = vector.extract_strided_slice %61 {offsets = [0, 128], sizes = [8, 128], strides = [1, 1]} : vector<8x256xf32> to vector<8x128xf32>
    %64 = vector.extract_strided_slice %53 {offsets = [0, 256], sizes = [8, 128], strides = [1, 1]} : vector<8x384xf32> to vector<8x128xf32>
    %65 = vector.extract_strided_slice %50 {offsets = [0, 256], sizes = [8, 128], strides = [1, 1]} : vector<8x384xf32> to vector<8x128xf32>
    %66 = arith.mulf %62, %65 : vector<8x128xf32>
    %67 = arith.addf %64, %66 : vector<8x128xf32>
    %68 = math.tanh %67 : vector<8x128xf32>
    %cst_20 = arith.constant 1.000000e+00 : f32
    %69 = vector.broadcast %cst_20 : f32 to vector<8x128xf32>
    %70 = arith.subf %69, %63 : vector<8x128xf32>
    %71 = arith.mulf %70, %68 : vector<8x128xf32>
    %72 = arith.mulf %63, %47 : vector<8x128xf32>
    %73 = arith.addf %71, %72 : vector<8x128xf32>
    %74 = arith.addi %0, %c1_i32 : i32
    %75 = vector.broadcast %74 : i32 to vector<8x1xi32>
    %76 = arith.cmpi sgt, %6, %75 : vector<8x1xi32>
    %cst_21 = arith.constant 0.000000e+00 : f32
    %77 = vector.shape_cast %76 : vector<8x1xi1> to vector<8x1xi1>
    %78 = vector.broadcast %77 : vector<8x1xi1> to vector<8x128xi1>
    %79 = vector.broadcast %cst_21 : f32 to vector<8x128xf32>
    %80 = arith.select %78, %73, %79 : vector<8x128xi1>, vector<8x128xf32>
    %81 = arith.index_cast %c1_i32 : i32 to index
    %c0_22 = arith.constant 0 : index
    %c0_23 = arith.constant 0 : index
    %82 = vector.load %arg6[%81, %c0_22, %c0_23] : memref<8x8x128xf32, #tpu.memory_space<vmem>>, vector<1x8x128xf32>
    %83 = vector.shape_cast %82 : vector<1x8x128xf32> to vector<8x128xf32>
    %84 = vector.shape_cast %80 : vector<8x128xf32> to vector<1x8x128xf32>
    tpu.vector_store %arg6[%81, %c0_22, %c0_23], %84 {strides = array<i32>} : memref<8x8x128xf32, #tpu.memory_space<vmem>>, vector<1x8x128xf32>,
    %85 = vector.shape_cast %76 : vector<8x1xi1> to vector<8x1xi1>
    %86 = vector.broadcast %85 : vector<8x1xi1> to vector<8x128xi1>
    %87 = arith.select %86, %73, %47 : vector<8x128xi1>, vector<8x128xf32>
    %c2_i32 = arith.constant 2 : i32
    %cst_24 = arith.constant dense<0.000000e+00> : vector<8x384xf32>
    %88 = tpu.matmul %87, %4, %cst_24 {dimension_numbers = #tpu.dot_dimension_numbers<[1], [0], [0], [1], [0, 0, 1, 1], [], []>} : vector<8x128xf32>, vector<128x384xf32>, vector<8x384xf32> -> vector<8x384xf32>
    %89 = vector.broadcast %5 : vector<1x384xf32> to vector<8x384xf32>
    %90 = arith.addf %88, %89 : vector<8x384xf32>
    %91 = arith.index_cast %c2_i32 : i32 to index
    %c0_25 = arith.constant 0 : index
    %c0_26 = arith.constant 0 : index
    %92 = vector.load %arg3[%91, %c0_25, %c0_26] : memref<8x8x384xf32, #tpu.memory_space<vmem>>, vector<1x8x384xf32>
    %93 = vector.shape_cast %92 : vector<1x8x384xf32> to vector<8x384xf32>
    %94 = vector.extract_strided_slice %93 {offsets = [0, 0], sizes = [8, 256], strides = [1, 1]} : vector<8x384xf32> to vector<8x256xf32>
    %95 = vector.extract_strided_slice %90 {offsets = [0, 0], sizes = [8, 256], strides = [1, 1]} : vector<8x384xf32> to vector<8x256xf32>
    %96 = arith.addf %94, %95 : vector<8x256xf32>
    %97 = arith.negf %96 : vector<8x256xf32>
    %98 = math.exp %97 : vector<8x256xf32>
    %cst_27 = arith.constant 1.000000e+00 : f32
    %99 = vector.broadcast %cst_27 : f32 to vector<8x256xf32>
    %100 = arith.addf %99, %98 : vector<8x256xf32>
    %101 = arith.divf %99, %100 : vector<8x256xf32>
    %102 = vector.extract_strided_slice %101 {offsets = [0, 0], sizes = [8, 128], strides = [1, 1]} : vector<8x256xf32> to vector<8x128xf32>
    %103 = vector.extract_strided_slice %101 {offsets = [0, 128], sizes = [8, 128], strides = [1, 1]} : vector<8x256xf32> to vector<8x128xf32>
    %104 = vector.extract_strided_slice %93 {offsets = [0, 256], sizes = [8, 128], strides = [1, 1]} : vector<8x384xf32> to vector<8x128xf32>
    %105 = vector.extract_strided_slice %90 {offsets = [0, 256], sizes = [8, 128], strides = [1, 1]} : vector<8x384xf32> to vector<8x128xf32>
    %106 = arith.mulf %102, %105 : vector<8x128xf32>
    %107 = arith.addf %104, %106 : vector<8x128xf32>
    %108 = math.tanh %107 : vector<8x128xf32>
    %cst_28 = arith.constant 1.000000e+00 : f32
    %109 = vector.broadcast %cst_28 : f32 to vector<8x128xf32>
    %110 = arith.subf %109, %103 : vector<8x128xf32>
    %111 = arith.mulf %110, %108 : vector<8x128xf32>
    %112 = arith.mulf %103, %87 : vector<8x128xf32>
    %113 = arith.addf %111, %112 : vector<8x128xf32>
    %114 = arith.addi %0, %c2_i32 : i32
    %115 = vector.broadcast %114 : i32 to vector<8x1xi32>
    %116 = arith.cmpi sgt, %6, %115 : vector<8x1xi32>
    %cst_29 = arith.constant 0.000000e+00 : f32
    %117 = vector.shape_cast %116 : vector<8x1xi1> to vector<8x1xi1>
    %118 = vector.broadcast %117 : vector<8x1xi1> to vector<8x128xi1>
    %119 = vector.broadcast %cst_29 : f32 to vector<8x128xf32>
    %120 = arith.select %118, %113, %119 : vector<8x128xi1>, vector<8x128xf32>
    %121 = arith.index_cast %c2_i32 : i32 to index
    %c0_30 = arith.constant 0 : index
    %c0_31 = arith.constant 0 : index
    %122 = vector.load %arg6[%121, %c0_30, %c0_31] : memref<8x8x128xf32, #tpu.memory_space<vmem>>, vector<1x8x128xf32>
    %123 = vector.shape_cast %122 : vector<1x8x128xf32> to vector<8x128xf32>
    %124 = vector.shape_cast %120 : vector<8x128xf32> to vector<1x8x128xf32>
    tpu.vector_store %arg6[%121, %c0_30, %c0_31], %124 {strides = array<i32>} : memref<8x8x128xf32, #tpu.memory_space<vmem>>, vector<1x8x128xf32>,
    %125 = vector.shape_cast %116 : vector<8x1xi1> to vector<8x1xi1>
    %126 = vector.broadcast %125 : vector<8x1xi1> to vector<8x128xi1>
    %127 = arith.select %126, %113, %87 : vector<8x128xi1>, vector<8x128xf32>
    %c3_i32 = arith.constant 3 : i32
    %cst_32 = arith.constant dense<0.000000e+00> : vector<8x384xf32>
    %128 = tpu.matmul %127, %4, %cst_32 {dimension_numbers = #tpu.dot_dimension_numbers<[1], [0], [0], [1], [0, 0, 1, 1], [], []>} : vector<8x128xf32>, vector<128x384xf32>, vector<8x384xf32> -> vector<8x384xf32>
    %129 = vector.broadcast %5 : vector<1x384xf32> to vector<8x384xf32>
    %130 = arith.addf %128, %129 : vector<8x384xf32>
    %131 = arith.index_cast %c3_i32 : i32 to index
    %c0_33 = arith.constant 0 : index
    %c0_34 = arith.constant 0 : index
    %132 = vector.load %arg3[%131, %c0_33, %c0_34] : memref<8x8x384xf32, #tpu.memory_space<vmem>>, vector<1x8x384xf32>
    %133 = vector.shape_cast %132 : vector<1x8x384xf32> to vector<8x384xf32>
    %134 = vector.extract_strided_slice %133 {offsets = [0, 0], sizes = [8, 256], strides = [1, 1]} : vector<8x384xf32> to vector<8x256xf32>
    %135 = vector.extract_strided_slice %130 {offsets = [0, 0], sizes = [8, 256], strides = [1, 1]} : vector<8x384xf32> to vector<8x256xf32>
    %136 = arith.addf %134, %135 : vector<8x256xf32>
    %137 = arith.negf %136 : vector<8x256xf32>
    %138 = math.exp %137 : vector<8x256xf32>
    %cst_35 = arith.constant 1.000000e+00 : f32
    %139 = vector.broadcast %cst_35 : f32 to vector<8x256xf32>
    %140 = arith.addf %139, %138 : vector<8x256xf32>
    %141 = arith.divf %139, %140 : vector<8x256xf32>
    %142 = vector.extract_strided_slice %141 {offsets = [0, 0], sizes = [8, 128], strides = [1, 1]} : vector<8x256xf32> to vector<8x128xf32>
    %143 = vector.extract_strided_slice %141 {offsets = [0, 128], sizes = [8, 128], strides = [1, 1]} : vector<8x256xf32> to vector<8x128xf32>
    %144 = vector.extract_strided_slice %133 {offsets = [0, 256], sizes = [8, 128], strides = [1, 1]} : vector<8x384xf32> to vector<8x128xf32>
    %145 = vector.extract_strided_slice %130 {offsets = [0, 256], sizes = [8, 128], strides = [1, 1]} : vector<8x384xf32> to vector<8x128xf32>
    %146 = arith.mulf %142, %145 : vector<8x128xf32>
    %147 = arith.addf %144, %146 : vector<8x128xf32>
    %148 = math.tanh %147 : vector<8x128xf32>
    %cst_36 = arith.constant 1.000000e+00 : f32
    %149 = vector.broadcast %cst_36 : f32 to vector<8x128xf32>
    %150 = arith.subf %149, %143 : vector<8x128xf32>
    %151 = arith.mulf %150, %148 : vector<8x128xf32>
    %152 = arith.mulf %143, %127 : vector<8x128xf32>
    %153 = arith.addf %151, %152 : vector<8x128xf32>
    %154 = arith.addi %0, %c3_i32 : i32
    %155 = vector.broadcast %154 : i32 to vector<8x1xi32>
    %156 = arith.cmpi sgt, %6, %155 : vector<8x1xi32>
    %cst_37 = arith.constant 0.000000e+00 : f32
    %157 = vector.shape_cast %156 : vector<8x1xi1> to vector<8x1xi1>
    %158 = vector.broadcast %157 : vector<8x1xi1> to vector<8x128xi1>
    %159 = vector.broadcast %cst_37 : f32 to vector<8x128xf32>
    %160 = arith.select %158, %153, %159 : vector<8x128xi1>, vector<8x128xf32>
    %161 = arith.index_cast %c3_i32 : i32 to index
    %c0_38 = arith.constant 0 : index
    %c0_39 = arith.constant 0 : index
    %162 = vector.load %arg6[%161, %c0_38, %c0_39] : memref<8x8x128xf32, #tpu.memory_space<vmem>>, vector<1x8x128xf32>
    %163 = vector.shape_cast %162 : vector<1x8x128xf32> to vector<8x128xf32>
    %164 = vector.shape_cast %160 : vector<8x128xf32> to vector<1x8x128xf32>
    tpu.vector_store %arg6[%161, %c0_38, %c0_39], %164 {strides = array<i32>} : memref<8x8x128xf32, #tpu.memory_space<vmem>>, vector<1x8x128xf32>,
    %165 = vector.shape_cast %156 : vector<8x1xi1> to vector<8x1xi1>
    %166 = vector.broadcast %165 : vector<8x1xi1> to vector<8x128xi1>
    %167 = arith.select %166, %153, %127 : vector<8x128xi1>, vector<8x128xf32>
    %c4_i32 = arith.constant 4 : i32
    %cst_40 = arith.constant dense<0.000000e+00> : vector<8x384xf32>
    %168 = tpu.matmul %167, %4, %cst_40 {dimension_numbers = #tpu.dot_dimension_numbers<[1], [0], [0], [1], [0, 0, 1, 1], [], []>} : vector<8x128xf32>, vector<128x384xf32>, vector<8x384xf32> -> vector<8x384xf32>
    %169 = vector.broadcast %5 : vector<1x384xf32> to vector<8x384xf32>
    %170 = arith.addf %168, %169 : vector<8x384xf32>
    %171 = arith.index_cast %c4_i32 : i32 to index
    %c0_41 = arith.constant 0 : index
    %c0_42 = arith.constant 0 : index
    %172 = vector.load %arg3[%171, %c0_41, %c0_42] : memref<8x8x384xf32, #tpu.memory_space<vmem>>, vector<1x8x384xf32>
    %173 = vector.shape_cast %172 : vector<1x8x384xf32> to vector<8x384xf32>
    %174 = vector.extract_strided_slice %173 {offsets = [0, 0], sizes = [8, 256], strides = [1, 1]} : vector<8x384xf32> to vector<8x256xf32>
    %175 = vector.extract_strided_slice %170 {offsets = [0, 0], sizes = [8, 256], strides = [1, 1]} : vector<8x384xf32> to vector<8x256xf32>
    %176 = arith.addf %174, %175 : vector<8x256xf32>
    %177 = arith.negf %176 : vector<8x256xf32>
    %178 = math.exp %177 : vector<8x256xf32>
    %cst_43 = arith.constant 1.000000e+00 : f32
    %179 = vector.broadcast %cst_43 : f32 to vector<8x256xf32>
    %180 = arith.addf %179, %178 : vector<8x256xf32>
    %181 = arith.divf %179, %180 : vector<8x256xf32>
    %182 = vector.extract_strided_slice %181 {offsets = [0, 0], sizes = [8, 128], strides = [1, 1]} : vector<8x256xf32> to vector<8x128xf32>
    %183 = vector.extract_strided_slice %181 {offsets = [0, 128], sizes = [8, 128], strides = [1, 1]} : vector<8x256xf32> to vector<8x128xf32>
    %184 = vector.extract_strided_slice %173 {offsets = [0, 256], sizes = [8, 128], strides = [1, 1]} : vector<8x384xf32> to vector<8x128xf32>
    %185 = vector.extract_strided_slice %170 {offsets = [0, 256], sizes = [8, 128], strides = [1, 1]} : vector<8x384xf32> to vector<8x128xf32>
    %186 = arith.mulf %182, %185 : vector<8x128xf32>
    %187 = arith.addf %184, %186 : vector<8x128xf32>
    %188 = math.tanh %187 : vector<8x128xf32>
    %cst_44 = arith.constant 1.000000e+00 : f32
    %189 = vector.broadcast %cst_44 : f32 to vector<8x128xf32>
    %190 = arith.subf %189, %183 : vector<8x128xf32>
    %191 = arith.mulf %190, %188 : vector<8x128xf32>
    %192 = arith.mulf %183, %167 : vector<8x128xf32>
    %193 = arith.addf %191, %192 : vector<8x128xf32>
    %194 = arith.addi %0, %c4_i32 : i32
    %195 = vector.broadcast %194 : i32 to vector<8x1xi32>
    %196 = arith.cmpi sgt, %6, %195 : vector<8x1xi32>
    %cst_45 = arith.constant 0.000000e+00 : f32
    %197 = vector.shape_cast %196 : vector<8x1xi1> to vector<8x1xi1>
    %198 = vector.broadcast %197 : vector<8x1xi1> to vector<8x128xi1>
    %199 = vector.broadcast %cst_45 : f32 to vector<8x128xf32>
    %200 = arith.select %198, %193, %199 : vector<8x128xi1>, vector<8x128xf32>
    %201 = arith.index_cast %c4_i32 : i32 to index
    %c0_46 = arith.constant 0 : index
    %c0_47 = arith.constant 0 : index
    %202 = vector.load %arg6[%201, %c0_46, %c0_47] : memref<8x8x128xf32, #tpu.memory_space<vmem>>, vector<1x8x128xf32>
    %203 = vector.shape_cast %202 : vector<1x8x128xf32> to vector<8x128xf32>
    %204 = vector.shape_cast %200 : vector<8x128xf32> to vector<1x8x128xf32>
    tpu.vector_store %arg6[%201, %c0_46, %c0_47], %204 {strides = array<i32>} : memref<8x8x128xf32, #tpu.memory_space<vmem>>, vector<1x8x128xf32>,
    %205 = vector.shape_cast %196 : vector<8x1xi1> to vector<8x1xi1>
    %206 = vector.broadcast %205 : vector<8x1xi1> to vector<8x128xi1>
    %207 = arith.select %206, %193, %167 : vector<8x128xi1>, vector<8x128xf32>
    %c5_i32 = arith.constant 5 : i32
    %cst_48 = arith.constant dense<0.000000e+00> : vector<8x384xf32>
    %208 = tpu.matmul %207, %4, %cst_48 {dimension_numbers = #tpu.dot_dimension_numbers<[1], [0], [0], [1], [0, 0, 1, 1], [], []>} : vector<8x128xf32>, vector<128x384xf32>, vector<8x384xf32> -> vector<8x384xf32>
    %209 = vector.broadcast %5 : vector<1x384xf32> to vector<8x384xf32>
    %210 = arith.addf %208, %209 : vector<8x384xf32>
    %211 = arith.index_cast %c5_i32 : i32 to index
    %c0_49 = arith.constant 0 : index
    %c0_50 = arith.constant 0 : index
    %212 = vector.load %arg3[%211, %c0_49, %c0_50] : memref<8x8x384xf32, #tpu.memory_space<vmem>>, vector<1x8x384xf32>
    %213 = vector.shape_cast %212 : vector<1x8x384xf32> to vector<8x384xf32>
    %214 = vector.extract_strided_slice %213 {offsets = [0, 0], sizes = [8, 256], strides = [1, 1]} : vector<8x384xf32> to vector<8x256xf32>
    %215 = vector.extract_strided_slice %210 {offsets = [0, 0], sizes = [8, 256], strides = [1, 1]} : vector<8x384xf32> to vector<8x256xf32>
    %216 = arith.addf %214, %215 : vector<8x256xf32>
    %217 = arith.negf %216 : vector<8x256xf32>
    %218 = math.exp %217 : vector<8x256xf32>
    %cst_51 = arith.constant 1.000000e+00 : f32
    %219 = vector.broadcast %cst_51 : f32 to vector<8x256xf32>
    %220 = arith.addf %219, %218 : vector<8x256xf32>
    %221 = arith.divf %219, %220 : vector<8x256xf32>
    %222 = vector.extract_strided_slice %221 {offsets = [0, 0], sizes = [8, 128], strides = [1, 1]} : vector<8x256xf32> to vector<8x128xf32>
    %223 = vector.extract_strided_slice %221 {offsets = [0, 128], sizes = [8, 128], strides = [1, 1]} : vector<8x256xf32> to vector<8x128xf32>
    %224 = vector.extract_strided_slice %213 {offsets = [0, 256], sizes = [8, 128], strides = [1, 1]} : vector<8x384xf32> to vector<8x128xf32>
    %225 = vector.extract_strided_slice %210 {offsets = [0, 256], sizes = [8, 128], strides = [1, 1]} : vector<8x384xf32> to vector<8x128xf32>
    %226 = arith.mulf %222, %225 : vector<8x128xf32>
    %227 = arith.addf %224, %226 : vector<8x128xf32>
    %228 = math.tanh %227 : vector<8x128xf32>
    %cst_52 = arith.constant 1.000000e+00 : f32
    %229 = vector.broadcast %cst_52 : f32 to vector<8x128xf32>
    %230 = arith.subf %229, %223 : vector<8x128xf32>
    %231 = arith.mulf %230, %228 : vector<8x128xf32>
    %232 = arith.mulf %223, %207 : vector<8x128xf32>
    %233 = arith.addf %231, %232 : vector<8x128xf32>
    %234 = arith.addi %0, %c5_i32 : i32
    %235 = vector.broadcast %234 : i32 to vector<8x1xi32>
    %236 = arith.cmpi sgt, %6, %235 : vector<8x1xi32>
    %cst_53 = arith.constant 0.000000e+00 : f32
    %237 = vector.shape_cast %236 : vector<8x1xi1> to vector<8x1xi1>
    %238 = vector.broadcast %237 : vector<8x1xi1> to vector<8x128xi1>
    %239 = vector.broadcast %cst_53 : f32 to vector<8x128xf32>
    %240 = arith.select %238, %233, %239 : vector<8x128xi1>, vector<8x128xf32>
    %241 = arith.index_cast %c5_i32 : i32 to index
    %c0_54 = arith.constant 0 : index
    %c0_55 = arith.constant 0 : index
    %242 = vector.load %arg6[%241, %c0_54, %c0_55] : memref<8x8x128xf32, #tpu.memory_space<vmem>>, vector<1x8x128xf32>
    %243 = vector.shape_cast %242 : vector<1x8x128xf32> to vector<8x128xf32>
    %244 = vector.shape_cast %240 : vector<8x128xf32> to vector<1x8x128xf32>
    tpu.vector_store %arg6[%241, %c0_54, %c0_55], %244 {strides = array<i32>} : memref<8x8x128xf32, #tpu.memory_space<vmem>>, vector<1x8x128xf32>,
    %245 = vector.shape_cast %236 : vector<8x1xi1> to vector<8x1xi1>
    %246 = vector.broadcast %245 : vector<8x1xi1> to vector<8x128xi1>
    %247 = arith.select %246, %233, %207 : vector<8x128xi1>, vector<8x128xf32>
    %c6_i32 = arith.constant 6 : i32
    %cst_56 = arith.constant dense<0.000000e+00> : vector<8x384xf32>
    %248 = tpu.matmul %247, %4, %cst_56 {dimension_numbers = #tpu.dot_dimension_numbers<[1], [0], [0], [1], [0, 0, 1, 1], [], []>} : vector<8x128xf32>, vector<128x384xf32>, vector<8x384xf32> -> vector<8x384xf32>
    %249 = vector.broadcast %5 : vector<1x384xf32> to vector<8x384xf32>
    %250 = arith.addf %248, %249 : vector<8x384xf32>
    %251 = arith.index_cast %c6_i32 : i32 to index
    %c0_57 = arith.constant 0 : index
    %c0_58 = arith.constant 0 : index
    %252 = vector.load %arg3[%251, %c0_57, %c0_58] : memref<8x8x384xf32, #tpu.memory_space<vmem>>, vector<1x8x384xf32>
    %253 = vector.shape_cast %252 : vector<1x8x384xf32> to vector<8x384xf32>
    %254 = vector.extract_strided_slice %253 {offsets = [0, 0], sizes = [8, 256], strides = [1, 1]} : vector<8x384xf32> to vector<8x256xf32>
    %255 = vector.extract_strided_slice %250 {offsets = [0, 0], sizes = [8, 256], strides = [1, 1]} : vector<8x384xf32> to vector<8x256xf32>
    %256 = arith.addf %254, %255 : vector<8x256xf32>
    %257 = arith.negf %256 : vector<8x256xf32>
    %258 = math.exp %257 : vector<8x256xf32>
    %cst_59 = arith.constant 1.000000e+00 : f32
    %259 = vector.broadcast %cst_59 : f32 to vector<8x256xf32>
    %260 = arith.addf %259, %258 : vector<8x256xf32>
    %261 = arith.divf %259, %260 : vector<8x256xf32>
    %262 = vector.extract_strided_slice %261 {offsets = [0, 0], sizes = [8, 128], strides = [1, 1]} : vector<8x256xf32> to vector<8x128xf32>
    %263 = vector.extract_strided_slice %261 {offsets = [0, 128], sizes = [8, 128], strides = [1, 1]} : vector<8x256xf32> to vector<8x128xf32>
    %264 = vector.extract_strided_slice %253 {offsets = [0, 256], sizes = [8, 128], strides = [1, 1]} : vector<8x384xf32> to vector<8x128xf32>
    %265 = vector.extract_strided_slice %250 {offsets = [0, 256], sizes = [8, 128], strides = [1, 1]} : vector<8x384xf32> to vector<8x128xf32>
    %266 = arith.mulf %262, %265 : vector<8x128xf32>
    %267 = arith.addf %264, %266 : vector<8x128xf32>
    %268 = math.tanh %267 : vector<8x128xf32>
    %cst_60 = arith.constant 1.000000e+00 : f32
    %269 = vector.broadcast %cst_60 : f32 to vector<8x128xf32>
    %270 = arith.subf %269, %263 : vector<8x128xf32>
    %271 = arith.mulf %270, %268 : vector<8x128xf32>
    %272 = arith.mulf %263, %247 : vector<8x128xf32>
    %273 = arith.addf %271, %272 : vector<8x128xf32>
    %274 = arith.addi %0, %c6_i32 : i32
    %275 = vector.broadcast %274 : i32 to vector<8x1xi32>
    %276 = arith.cmpi sgt, %6, %275 : vector<8x1xi32>
    %cst_61 = arith.constant 0.000000e+00 : f32
    %277 = vector.shape_cast %276 : vector<8x1xi1> to vector<8x1xi1>
    %278 = vector.broadcast %277 : vector<8x1xi1> to vector<8x128xi1>
    %279 = vector.broadcast %cst_61 : f32 to vector<8x128xf32>
    %280 = arith.select %278, %273, %279 : vector<8x128xi1>, vector<8x128xf32>
    %281 = arith.index_cast %c6_i32 : i32 to index
    %c0_62 = arith.constant 0 : index
    %c0_63 = arith.constant 0 : index
    %282 = vector.load %arg6[%281, %c0_62, %c0_63] : memref<8x8x128xf32, #tpu.memory_space<vmem>>, vector<1x8x128xf32>
    %283 = vector.shape_cast %282 : vector<1x8x128xf32> to vector<8x128xf32>
    %284 = vector.shape_cast %280 : vector<8x128xf32> to vector<1x8x128xf32>
    tpu.vector_store %arg6[%281, %c0_62, %c0_63], %284 {strides = array<i32>} : memref<8x8x128xf32, #tpu.memory_space<vmem>>, vector<1x8x128xf32>,
    %285 = vector.shape_cast %276 : vector<8x1xi1> to vector<8x1xi1>
    %286 = vector.broadcast %285 : vector<8x1xi1> to vector<8x128xi1>
    %287 = arith.select %286, %273, %247 : vector<8x128xi1>, vector<8x128xf32>
    %c7_i32 = arith.constant 7 : i32
    %cst_64 = arith.constant dense<0.000000e+00> : vector<8x384xf32>
    %288 = tpu.matmul %287, %4, %cst_64 {dimension_numbers = #tpu.dot_dimension_numbers<[1], [0], [0], [1], [0, 0, 1, 1], [], []>} : vector<8x128xf32>, vector<128x384xf32>, vector<8x384xf32> -> vector<8x384xf32>
    %289 = vector.broadcast %5 : vector<1x384xf32> to vector<8x384xf32>
    %290 = arith.addf %288, %289 : vector<8x384xf32>
    %291 = arith.index_cast %c7_i32 : i32 to index
    %c0_65 = arith.constant 0 : index
    %c0_66 = arith.constant 0 : index
    %292 = vector.load %arg3[%291, %c0_65, %c0_66] : memref<8x8x384xf32, #tpu.memory_space<vmem>>, vector<1x8x384xf32>
    %293 = vector.shape_cast %292 : vector<1x8x384xf32> to vector<8x384xf32>
    %294 = vector.extract_strided_slice %293 {offsets = [0, 0], sizes = [8, 256], strides = [1, 1]} : vector<8x384xf32> to vector<8x256xf32>
    %295 = vector.extract_strided_slice %290 {offsets = [0, 0], sizes = [8, 256], strides = [1, 1]} : vector<8x384xf32> to vector<8x256xf32>
    %296 = arith.addf %294, %295 : vector<8x256xf32>
    %297 = arith.negf %296 : vector<8x256xf32>
    %298 = math.exp %297 : vector<8x256xf32>
    %cst_67 = arith.constant 1.000000e+00 : f32
    %299 = vector.broadcast %cst_67 : f32 to vector<8x256xf32>
    %300 = arith.addf %299, %298 : vector<8x256xf32>
    %301 = arith.divf %299, %300 : vector<8x256xf32>
    %302 = vector.extract_strided_slice %301 {offsets = [0, 0], sizes = [8, 128], strides = [1, 1]} : vector<8x256xf32> to vector<8x128xf32>
    %303 = vector.extract_strided_slice %301 {offsets = [0, 128], sizes = [8, 128], strides = [1, 1]} : vector<8x256xf32> to vector<8x128xf32>
    %304 = vector.extract_strided_slice %293 {offsets = [0, 256], sizes = [8, 128], strides = [1, 1]} : vector<8x384xf32> to vector<8x128xf32>
    %305 = vector.extract_strided_slice %290 {offsets = [0, 256], sizes = [8, 128], strides = [1, 1]} : vector<8x384xf32> to vector<8x128xf32>
    %306 = arith.mulf %302, %305 : vector<8x128xf32>
    %307 = arith.addf %304, %306 : vector<8x128xf32>
    %308 = math.tanh %307 : vector<8x128xf32>
    %cst_68 = arith.constant 1.000000e+00 : f32
    %309 = vector.broadcast %cst_68 : f32 to vector<8x128xf32>
    %310 = arith.subf %309, %303 : vector<8x128xf32>
    %311 = arith.mulf %310, %308 : vector<8x128xf32>
    %312 = arith.mulf %303, %287 : vector<8x128xf32>
    %313 = arith.addf %311, %312 : vector<8x128xf32>
    %314 = arith.addi %0, %c7_i32 : i32
    %315 = vector.broadcast %314 : i32 to vector<8x1xi32>
    %316 = arith.cmpi sgt, %6, %315 : vector<8x1xi32>
    %cst_69 = arith.constant 0.000000e+00 : f32
    %317 = vector.shape_cast %316 : vector<8x1xi1> to vector<8x1xi1>
    %318 = vector.broadcast %317 : vector<8x1xi1> to vector<8x128xi1>
    %319 = vector.broadcast %cst_69 : f32 to vector<8x128xf32>
    %320 = arith.select %318, %313, %319 : vector<8x128xi1>, vector<8x128xf32>
    %321 = arith.index_cast %c7_i32 : i32 to index
    %c0_70 = arith.constant 0 : index
    %c0_71 = arith.constant 0 : index
    %322 = vector.load %arg6[%321, %c0_70, %c0_71] : memref<8x8x128xf32, #tpu.memory_space<vmem>>, vector<1x8x128xf32>
    %323 = vector.shape_cast %322 : vector<1x8x128xf32> to vector<8x128xf32>
    %324 = vector.shape_cast %320 : vector<8x128xf32> to vector<1x8x128xf32>
    tpu.vector_store %arg6[%321, %c0_70, %c0_71], %324 {strides = array<i32>} : memref<8x8x128xf32, #tpu.memory_space<vmem>>, vector<1x8x128xf32>,
    %325 = vector.shape_cast %316 : vector<8x1xi1> to vector<8x1xi1>
    %326 = vector.broadcast %325 : vector<8x1xi1> to vector<8x128xi1>
    %327 = arith.select %326, %313, %287 : vector<8x128xi1>, vector<8x128xf32>
    %c8_i32_72 = arith.constant 8 : i32
    %c0_73 = arith.constant 0 : index
    %c0_74 = arith.constant 0 : index
    %328 = vector.load %arg7[%c0_73, %c0_74] : memref<8x128xf32, #tpu.memory_space<vmem>>, vector<8x128xf32>
    tpu.vector_store %arg7[%c0_73, %c0_74], %327 {strides = array<i32>} : memref<8x128xf32, #tpu.memory_space<vmem>>, vector<8x128xf32>,
    return
  }
  func.func @transform_0(%arg0: i32, %arg1: i32) -> (i32, i32) {
    %c0_i32 = arith.constant 0 : i32
    %c0_i32_0 = arith.constant 0 : i32
    return %arg0, %c0_i32 : i32, i32
  }
  func.func @transform_1(%arg0: i32, %arg1: i32) -> (i32, i32, i32) {
    %c0_i32 = arith.constant 0 : i32
    %c0_i32_0 = arith.constant 0 : i32
    return %arg1, %arg0, %c0_i32 : i32, i32, i32
  }
  func.func @transform_2(%arg0: i32, %arg1: i32) -> (i32, i32) {
    %c0_i32 = arith.constant 0 : i32
    %c0_i32_0 = arith.constant 0 : i32
    %c0_i32_1 = arith.constant 0 : i32
    return %c0_i32, %c0_i32_0 : i32, i32
  }
  func.func @transform_3(%arg0: i32, %arg1: i32) -> (i32, i32) {
    %c0_i32 = arith.constant 0 : i32
    %c0_i32_0 = arith.constant 0 : i32
    %c0_i32_1 = arith.constant 0 : i32
    return %c0_i32, %c0_i32_0 : i32, i32
  }
  func.func @transform_4(%arg0: i32, %arg1: i32) -> (i32, i32, i32) {
    %c0_i32 = arith.constant 0 : i32
    %c0_i32_0 = arith.constant 0 : i32
    return %arg1, %arg0, %c0_i32 : i32, i32, i32
  }
  func.func @transform_5(%arg0: i32, %arg1: i32) -> (i32, i32) {
    %c0_i32 = arith.constant 0 : i32
    %c0_i32_0 = arith.constant 0 : i32
    return %arg0, %c0_i32 : i32, i32
  }
}

</mosaic_0001>

<bundles_post_ra>
// kernel: tpu_custom_call.1
= control target key start
LH: loop header
LB: loop body
LE: loop exit
PB: predicated region body
PF: predicated region fallthrough
CT: control target
= control target key end

     0   :  { %11 = vsyncpa [#allocation3], 0  ;;  %s3166_s0 = inlined_call_operand.vmem [shape: s32[8,1], index: 0, kind: input, shape index: {}]   ;;  %s3167_s1 = inlined_call_operand.hbm [shape: f32[8,8,384], index: 1, kind: input, shape index: {}]   ;;  %s3168_s2 = inlined_call_operand.hbm [shape: f32[128,384], index: 2, kind: input, shape index: {}]   ;;  %s3169_s3 = inlined_call_operand.vmem [shape: f32[1,384], index: 3, kind: input, shape index: {}]   ;;  %s3170_s4 = inlined_call_operand.hbm [shape: f32[8,8,128], index: 4, kind: output, shape index: {0}]   ;;  %s3171_s5 = inlined_call_operand.hbm [shape: f32[8,128], index: 5, kind: output, shape index: {1}]  }
   0x1   :  { %12 = vsyncpa [#allocation6], 0 }
   0x2   :  { %13 = vsyncpa [#allocation4], 0 }
   0x3   :  { %14 = vsyncpa [#allocation9], 0  ;;  %s2648_s18 = smov [#allocation2]   ;;  %s2552_s22 = scalar_lea.hbm %s3167_s1, 3072 }
   0x4   :  { %s22_s19 = sshll.u32 %s2648_s18, 4  ;;  %p2553_p0 = scmp.ne.s32.totalorder %s3167_s1, %s2552_s22  ;;  %s23_s19 = int_to_ptr.vmem [resolvable:$true] %s22_s19 }
   0x5   :  { %p2556_p1 = scmp.lt.u32.totalorder %s2552_s22, %s3167_s1 }
   0x7   :  { %p2558_p2 = pnand %p2556_p1, %p2553_p0 }
   0x9   :  { %2561 = shalt.err (!%p2558_p2)
}
   0xa   :  { %s2562_s27 = scalar_lea.vmem %s23_s19, 3072  ;;  %p2567_p4 = scmp.lt.s32.totalorder %s23_s19, %s23_s19 }
   0xb   :  { %p2563_p3 = scmp.ne.s32.totalorder %s23_s19, %s2562_s27  ;;  %p2568_p5 = scmp.lt.s32.totalorder %s2562_s27, %s2562_s27 }
   0xd   :  { %p2569_p6 = por %p2568_p5, %p2567_p4 }
   0xf   :  { %p2570_p7 = pnand %p2569_p6, %p2563_p3 }
  0x11   :  { %2573 = shalt.err (!%p2570_p7)
}
  0x12   :  { %s2649_s28 = smov 384   ;;  %s2650_s29 = smov 24  }
  0x13   :  { %28 = dma.hbm_to_vmem [thread:$0]  %s3167_s1, 3072, %s23_s19, [#allocation3], %s2649_s28, %s2649_s28, %s2650_s29  }
  0x14   :  { %s2651_s7 = smov [#allocation5]   ;;  %s2574_s11 = scalar_lea.hbm %s3168_s2, 6144 }
  0x15   :  { %s34_s8 = sshll.u32 %s2651_s7, 4  ;;  %p2575_p8 = scmp.ne.s32.totalorder %s3168_s2, %s2574_s11  ;;  %s35_s8 = int_to_ptr.vmem [resolvable:$true] %s34_s8 }
  0x16   :  { %p2578_p9 = scmp.lt.u32.totalorder %s2574_s11, %s3168_s2 }
  0x18   :  { %p2580_p10 = pnand %p2578_p9, %p2575_p8 }
  0x1a   :  { %2583 = shalt.err (!%p2580_p10)
}
  0x1b   :  { %s2584_s16 = scalar_lea.vmem %s35_s8, 6144  ;;  %p2589_p12 = scmp.lt.s32.totalorder %s35_s8, %s35_s8 }
  0x1c   :  { %p2585_p11 = scmp.ne.s32.totalorder %s35_s8, %s2584_s16  ;;  %p2590_p13 = scmp.lt.s32.totalorder %s2584_s16, %s2584_s16 }
  0x1e   :  { %p2591_p0 = por %p2590_p13, %p2589_p12 }
  0x20   :  { %p2592_p1 = pnand %p2591_p0, %p2585_p11 }
  0x22   :  { %2595 = shalt.err (!%p2592_p1)
}
  0x23   :  { %40 = dma.hbm_to_vmem [thread:$0]  %s3168_s2, 6144, %s35_s8, [#allocation6], %s2649_s28, %s2649_s28, %s2650_s29  }
  0x24   :  { %2640 = dma.done.wait [#allocation3], 3072  }
  0x25   :  { %2641 = vsyncadd [#allocation3], 4294964224 }
  0x26   :  { %2642 = dma.done.wait [#allocation6], 6144  }
  0x27   :  { %2643 = vsyncadd [#allocation6], 4294961152  ;;  %v2652_v0 = vmov 0.0|0.0   ;;  %v2653_v1 = vmov 0.0   ;;  %vm2654_vm0 = vmmov 0   ;;  %v2655_v2 = vmov 0  }
  0x28   :  { %2040 = vmatprep.subr.bf16.mxu1 %v2652_v0  ;;  %186 = vmatprep.mubr.f32.mxu0 %v2653_v1  ;;  %v56_v3 = vld [vmem:[#allocation5 + $0x8] sm:$0xff]  ;;  %v59_v4 = vld [vmem:[#allocation5 + $0x20] sm:$0xff]  ;;  %v58_v7 = vld [vmem:[#allocation5 + $0x18] sm:$0xff]  ;;  %s2657_s21 = smov [#allocation8]  }
  0x29   :  { %1760 = vmatprep.mubr.msk.f32.mxu1 %vm2654_vm0, %v2653_v1  ;;  %2468 = vset.pattern.permute.xlu0 %v2655_v2  ;;  %v55_v5 = vld [vmem:[#allocation5] sm:$0xff]  ;;  %v2720_v6 = vpack.c.bf16 %v59_v4, %v56_v3  ;;  %v62_v8 = vld [vmem:[#allocation5 + $0x38] sm:$0xff]  ;;  %v65_v9 = vld [vmem:[#allocation5 + $0x50] sm:$0xff]  ;;  %s1562_s22 = sshll.u32 %s2657_s21, 4  ;;  %s3135_s22 = int_to_ptr.vmem [resolvable:$true] %s1562_s22 }
  0x2a   :  { %2469 = vset.pattern.permute.xlu1 %v2655_v2  ;;  %v2722_v10 = vpack.c.bf16 %v58_v7, %v55_v5  ;;  %v2724_v11 = vpack.c.bf16 %v65_v9, %v62_v8  ;;  %v61_v12 = vld [vmem:[#allocation5 + $0x30] sm:$0xff]  ;;  %v64_v13 = vld [vmem:[#allocation5 + $0x48] sm:$0xff]  ;;  %v71_v15 = vld [vmem:[#allocation5 + $0x80] sm:$0xff] }
  0x2b   :  { %v68_v14 = vld [vmem:[#allocation5 + $0x68] sm:$0xff]  ;;  %2009 = vmatprep.subr.bf16.mxu0 %v2720_v6  ;;  %v2728_v16 = vpack.c.bf16 %v64_v13, %v61_v12  ;;  %v67_v18 = vld [vmem:[#allocation5 + $0x60] sm:$0xff]  ;;  %v70_v19 = vld [vmem:[#allocation5 + $0x78] sm:$0xff] }
  0x2c   :  { %2011 = vmatpush1.bf16.msra.mxu0 %v2722_v10  ;;  %v2731_v17 = vpack.c.bf16 %v71_v15, %v68_v14  ;;  %v74_v20 = vld [vmem:[#allocation5 + $0x98] sm:$0xff]  ;;  %v77_v21 = vld [vmem:[#allocation5 + $0xb0] sm:$0xff]  ;;  %v2734_v22 = vpack.c.bf16 %v70_v19, %v67_v18  ;;  %v76_v25 = vld [vmem:[#allocation5 + $0xa8] sm:$0xff] }
  0x2d   :  { %2013 = vmatprep.subr.bf16.mxu0 %v2724_v11  ;;  %v2737_v23 = vpack.c.bf16 %v77_v21, %v74_v20  ;;  %v73_v24 = vld [vmem:[#allocation5 + $0x90] sm:$0xff]  ;;  %v80_v26 = vld [vmem:[#allocation5 + $0xc8] sm:$0xff]  ;;  %v83_v27 = vld [vmem:[#allocation5 + $0xe0] sm:$0xff] }
  0x2e   :  { %v57_v28 = vld [vmem:[#allocation5 + $0x10] sm:$0xff]  ;;  %v60_v29 = vld [vmem:[#allocation5 + $0x28] sm:$0xff]  ;;  %v63_v31 = vld [vmem:[#allocation5 + $0x40] sm:$0xff]  ;;  %v2742_v33 = vpack.c.bf16 %v76_v25, %v73_v24  ;;  %v2745_v34 = vpack.c.bf16 %v83_v27, %v80_v26  ;;  %v107_v26 = vlaneseq }
  0x2f   :  { %v2739_v30 = vpack.c.bf16 %v60_v29, %v57_v28  ;;  %v66_v32 = vld [vmem:[#allocation5 + $0x58] sm:$0xff]  ;;  %v79_v35 = vld [vmem:[#allocation5 + $0xc0] sm:$0xff]  ;;  %v89_v39 = vld [vmem:[#allocation5 + $0x110] sm:$0xff] }
  0x30   :  { %2015 = vmatpush1.bf16.msra.mxu0 %v2728_v16  ;;  %v82_v36 = vld [vmem:[#allocation5 + $0xd8] sm:$0xff]  ;;  %v2748_v38 = vpack.c.bf16 %v66_v32, %v63_v31  ;;  %v69_v40 = vld [vmem:[#allocation5 + $0x70] sm:$0xff]  ;;  %v72_v41 = vld [vmem:[#allocation5 + $0x88] sm:$0xff]  ;;  %v108_v27 = vshrl.u32 %v107_v26, 7 }
  0x31   :  { %2017 = vmatprep.subr.bf16.mxu0 %v2731_v17  ;;  %v86_v37 = vld [vmem:[#allocation5 + $0xf8] sm:$0xff]  ;;  %2042 = vmatpush3.bf16.msra.mxu1 %v2739_v30  ;;  %v2752_v42 = vpack.c.bf16 %v82_v36, %v79_v35  ;;  %v2757_v43 = vld [vmem:[%s3166_s0] sm:$0xff]  ;;  %v88_v46 = vld [vmem:[#allocation5 + $0x108] sm:$0xff]  ;;  %v2763_v48 = vpack.c.bf16 %v72_v41, %v69_v40 }
  0x32   :  { %2043 = vmatprep.subr.bf16.mxu1 %v2652_v0  ;;  %v2760_v44 = vpack.c.bf16 %v89_v39, %v86_v37  ;;  %v85_v45 = vld [vmem:[#allocation5 + $0xf0] sm:$0xff]  ;;  %v92_v47 = vld [vmem:[#allocation5 + $0x128] sm:$0xff]  ;;  %vm288_vm1 = vcmp.gt.s32.totalorder %v2757_v43, 0  ;;  %vm465_vm2 = vcmp.gt.s32.totalorder %v2757_v43, 1  ;;  %v95_v49 = vld [vmem:[#allocation5 + $0x140] sm:$0xff]  ;;  %vm999_vm3 = vcmp.gt.s32.totalorder %v2757_v43, 4 }
  0x33   :  { %v75_v50 = vld [vmem:[#allocation5 + $0xa0] sm:$0xff]  ;;  %v78_v51 = vld [vmem:[#allocation5 + $0xb8] sm:$0xff]  ;;  %v289_v52 = vsel %vm288_vm1, 1, %v2655_v2  ;;  %v2770_v53 = vpack.c.bf16 %v88_v46, %v85_v45  ;;  %v466_v54 = vsel %vm465_vm2, 1, %v2655_v2  ;;  %v2774_v55 = vpack.c.bf16 %v95_v49, %v92_v47  ;;  %v101_v60 = vld [vmem:[#allocation5 + $0x170] sm:$0xff] }
  0x34   :  { %2019 = vmatpush1.bf16.msra.mxu0 %v2734_v22  ;;  %291 = vperm.xlu0 %2468, %v289_v52   ;;  %v91_v56 = vld [vmem:[#allocation5 + $0x120] sm:$0xff]  ;;  %v94_v57 = vld [vmem:[#allocation5 + $0x138] sm:$0xff]  ;;  %v2777_v59 = vpack.c.bf16 %v78_v51, %v75_v50  ;;  %v81_v61 = vld [vmem:[#allocation5 + $0xd0] sm:$0xff]  ;;  %v1000_v3 = vsel %vm999_vm3, 1, %v2655_v2  ;;  %vm1355_vm4 = vcmp.gt.s32.totalorder %v2757_v43, 6  ;;  %v109_v28 = vsub.s32 0, %v108_v27 }
  0x35   :  { %2021 = vmatprep.subr.bf16.mxu0 %v2737_v23  ;;  %2045 = vmatpush3.bf16.msra.mxu1 %v2748_v38  ;;  %v98_v58 = vld [vmem:[#allocation5 + $0x158] sm:$0xff]  ;;  %v84_v62 = vld [vmem:[#allocation5 + $0xe8] sm:$0xff]  ;;  %v2782_v63 = vpack.c.bf16 %v94_v57, %v91_v56  ;;  %v97_v5 = vld [vmem:[#allocation5 + $0x150] sm:$0xff]  ;;  %v1356_v14 = vsel %vm1355_vm4, 1, %v2655_v2  ;;  %v113_v31 = vsub.s32 1, %v108_v27  ;;  %v117_v57 = vsub.s32 2, %v108_v27 }
  0x36   :  { %2046 = vmatprep.subr.bf16.mxu1 %v2652_v0  ;;  %v2786_v4 = vpack.c.bf16 %v101_v60, %v98_v58  ;;  %v100_v7 = vld [vmem:[#allocation5 + $0x168] sm:$0xff]  ;;  %v2789_v8 = vpack.c.bf16 %v84_v62, %v81_v61  ;;  %v87_v9 = vld [vmem:[#allocation5 + $0x100] sm:$0xff]  ;;  %v90_v12 = vld [vmem:[#allocation5 + $0x118] sm:$0xff]  ;;  %vm643_vm6 = vcmp.gt.s32.totalorder %v2757_v43, 2  ;;  %vm821_vm7 = vcmp.gt.s32.totalorder %v2757_v43, 3 }
  0x37   :  { %v2794_v13 = vpack.c.bf16 %v100_v7, %v97_v5  ;;  %v2799_v15 = vpack.c.bf16 %v90_v12, %v87_v9  ;;  %v93_v18 = vld [vmem:[#allocation5 + $0x130] sm:$0xff]  ;;  %v96_v19 = vld [vmem:[#allocation5 + $0x148] sm:$0xff]  ;;  %v99_v21 = vld [vmem:[#allocation5 + $0x160] sm:$0xff]  ;;  %vm1177_vm8 = vcmp.gt.s32.totalorder %v2757_v43, 5  ;;  %vm1533_vm9 = vcmp.gt.s32.totalorder %v2757_v43, 7 }
  0x38   :  { %2023 = vmatpush1.bf16.msra.mxu0 %v2742_v33  ;;  %468 = vperm.xlu0 %2468, %v466_v54   ;;  %v2804_v20 = vpack.c.bf16 %v96_v19, %v93_v18  ;;  %v102_v24 = vld [vmem:[#allocation5 + $0x178] sm:$0xff]  ;;  %v103_v29 = vld [vmem:[%s3169_s3] sm:$0x7]  ;;  %v263_v37 = vld [vmem:[#allocation2] sm:$0xff]  ;;  %s2656_s3 = smov [#allocation7]  }
  0x39   :  { %2025 = vmatprep.subr.bf16.mxu0 %v2745_v34  ;;  %2048 = vmatpush3.bf16.msra.mxu1 %v2763_v48  ;;  %v2812_v25 = vpack.c.bf16 %v102_v24, %v99_v21  ;;  %v2854_v32 = vrot.slane %v103_v29, %v109_v28  ;;  %v2856_v35 = vrot.slane %v103_v29, %v113_v31  ;;  %v264_v46 = vld [vmem:[#allocation2 + $0x8] sm:$0xff]  ;;  %v265_v5 = vld [vmem:[#allocation2 + $0x10] sm:$0xff]  ;;  %v644_v28 = vsel %vm643_vm6, 1, %v2655_v2  ;;  %s1549_s20 = sshll.u32 %s2656_s3, 4  ;;  %s1550_s20 = int_to_ptr.vmem [resolvable:$true] %s1549_s20 }
  0x3a   :  { %2049 = vmatprep.subr.bf16.mxu1 %v2652_v0  ;;  %v2860_v58 = vrot.slane %v103_v29, %v117_v57  ;;  %646 = vperm.xlu1 %2469, %v644_v28   ;;  %v822_v29 = vsel %vm821_vm7, 1, %v2655_v2  ;;  %v1178_v31 = vsel %vm1177_vm8, 1, %v2655_v2  ;;  %v617_v28 = vld [vmem:[#allocation2 + $0x30] sm:$0xff]  ;;  %s2596_s23 = scalar_lea.vmem %s1550_s20, 1024  ;;  %p2601_p3 = scmp.lt.s32.totalorder %s1550_s20, %s1550_s20 }
  0x3b   :  { %p2597_p2 = scmp.ne.s32.totalorder %s1550_s20, %s2596_s23  ;;  %p2602_p4 = scmp.lt.s32.totalorder %s2596_s23, %s2596_s23 }
  0x3c   :  { %2027 = vmatpush1.bf16.msra.mxu0 %v2752_v42  ;;  %1002 = vperm.xlu0 %2468, %v1000_v3  }
  0x3d   :  { %2029 = vmatprep.subr.bf16.mxu0 %v2760_v44  ;;  %2051 = vmatpush3.bf16.msra.mxu1 %v2777_v59  ;;  %p2603_p5 = por %p2602_p4, %p2601_p3 }
  0x3e   :  { %2052 = vmatprep.subr.bf16.mxu1 %v2652_v0  ;;  %824 = vperm.xlu1 %2469, %v822_v29  }
  0x3f   :  { %p2604_p6 = pnand %p2603_p5, %p2597_p2 }
  0x40   :  { %2031 = vmatpush1.bf16.msra.mxu0 %v2770_v53  ;;  %1358 = vperm.xlu0 %2468, %v1356_v14  }
  0x41   :  { %2033 = vmatprep.subr.bf16.mxu0 %v2774_v55  ;;  %2054 = vmatpush3.bf16.msra.mxu1 %v2789_v8 }
  0x42   :  { %2055 = vmatprep.subr.bf16.mxu1 %v2652_v0  ;;  %1180 = vperm.xlu1 %2469, %v1178_v31  }
  0x44   :  { %2035 = vmatpush1.bf16.msra.mxu0 %v2782_v63 }
  0x45   :  { %2037 = vmatprep.subr.bf16.mxu0 %v2786_v4  ;;  %2057 = vmatpush3.bf16.msra.mxu1 %v2799_v15 }
  0x46   :  { %2058 = vmatprep.subr.bf16.mxu1 %v2652_v0 }
  0x48   :  { %2039 = vmatpush1.bf16.msra.mxu0 %v2794_v13 }
  0x49   :  { %2065 = vmatprep.subr.bf16.mxu0 %v2720_v6  ;;  %2060 = vmatpush3.bf16.msra.mxu1 %v2804_v20 }
  0x4a   :  { %2061 = vmatprep.subr.bf16.mxu1 %v2652_v0 }
  0x4b   :  { %187 = vmatmul.mubr.f32.vlgmr.msra.gmra.mrb[0].mxu0 %v2653_v1 }
  0x4c   :  { %2067 = vmatpush1.bf16.msra.mxu0 %v2722_v10  ;;  %361 = vmatprep.mubr.f32.mxu0 %v2653_v1 }
  0x4d   :  { %2069 = vmatprep.subr.bf16.mxu0 %v2724_v11  ;;  %2063 = vmatpush3.bf16.msra.mxu1 %v2812_v25 }
  0x4e   :  { %2096 = vmatprep.subr.bf16.mxu1 %v2652_v0 }
  0x50   :  { %2071 = vmatpush1.bf16.msra.mxu0 %v2728_v16  ;;  %1761 = vmatmul.mubr.f32.vlgmr.msra.gmra.mrb[0].mxu1 %v2653_v1 }
  0x51   :  { %2073 = vmatprep.subr.bf16.mxu0 %v2731_v17  ;;  %2098 = vmatpush3.bf16.msra.mxu1 %v2739_v30 }
  0x52   :  { %2099 = vmatprep.subr.bf16.mxu1 %v2652_v0  ;;  %1795 = vmatprep.mubr.msk.f32.mxu1 %vm2654_vm0, %v2653_v1 }
  0x54   :  { %2075 = vmatpush1.bf16.msra.mxu0 %v2734_v22 }
  0x55   :  { %2077 = vmatprep.subr.bf16.mxu0 %v2737_v23  ;;  %2101 = vmatpush3.bf16.msra.mxu1 %v2748_v38 }
  0x56   :  { %2102 = vmatprep.subr.bf16.mxu1 %v2652_v0 }
  0x58   :  { %2079 = vmatpush1.bf16.msra.mxu0 %v2742_v33 }
  0x59   :  { %2081 = vmatprep.subr.bf16.mxu0 %v2745_v34  ;;  %2104 = vmatpush3.bf16.msra.mxu1 %v2763_v48 }
  0x5a   :  { %2105 = vmatprep.subr.bf16.mxu1 %v2652_v0 }
  0x5c   :  { %2083 = vmatpush1.bf16.msra.mxu0 %v2752_v42 }
  0x5d   :  { %2085 = vmatprep.subr.bf16.mxu0 %v2760_v44  ;;  %2107 = vmatpush3.bf16.msra.mxu1 %v2777_v59 }
  0x5e   :  { %2108 = vmatprep.subr.bf16.mxu1 %v2652_v0 }
  0x60   :  { %2087 = vmatpush1.bf16.msra.mxu0 %v2770_v53 }
  0x61   :  { %2089 = vmatprep.subr.bf16.mxu0 %v2774_v55  ;;  %2110 = vmatpush3.bf16.msra.mxu1 %v2789_v8 }
  0x62   :  { %2111 = vmatprep.subr.bf16.mxu1 %v2652_v0 }
  0x64   :  { %2091 = vmatpush1.bf16.msra.mxu0 %v2782_v63 }
  0x65   :  { %2093 = vmatprep.subr.bf16.mxu0 %v2786_v4  ;;  %2113 = vmatpush3.bf16.msra.mxu1 %v2799_v15 }
  0x66   :  { %2114 = vmatprep.subr.bf16.mxu1 %v2652_v0 }
  0x68   :  { %2095 = vmatpush1.bf16.msra.mxu0 %v2794_v13 }
  0x69   :  { %2121 = vmatprep.subr.bf16.mxu0 %v2720_v6  ;;  %2116 = vmatpush3.bf16.msra.mxu1 %v2804_v20 }
  0x6a   :  { %2117 = vmatprep.subr.bf16.mxu1 %v2652_v0 }
  0x6d   :  { %2119 = vmatpush3.bf16.msra.mxu1 %v2812_v25 }
  0x6e   :  { %2152 = vmatprep.subr.bf16.mxu1 %v2652_v0 }
  0xb3   :  { %v292_v19 = vpop.permute.xlu0 %291 }
  0xb4   :  { %vm293_vm5 = vcmp.eq.s32.totalorder %v292_v19, 1 }
  0xb7   :  { %v469_v19 = vpop.permute.xlu0 %468 }
  0xb8   :  { %vm470_vm10 = vcmp.eq.s32.totalorder %v469_v19, 1  ;;  %v795_v19 = vld [vmem:[#allocation2 + $0x48] sm:$0xff] }
 0x11e   :  { %v188_v36 = vpop.f32.mrb[0].mxu0 }
 0x11f   :  { %v189_v39 = vadd.f32 %v188_v36, %v2854_v32  ;;  %v190_v40 = vpop.f32.mrb[1].mxu0  ;;  %v1534_v36 = vsel %vm1533_vm9, 1, %v2655_v2 }
 0x120   :  { %v191_v41 = vadd.f32 %v190_v40, %v2856_v35  ;;  %1536 = vperm.xlu1 %2469, %v1534_v36  }
 0x121   :  { %v266_v45 = vadd.f32 %v263_v37, %v189_v39  ;;  %v439_v39 = vld [vmem:[#allocation2 + $0x18] sm:$0xff] }
 0x122   :  { %v267_v49 = vadd.f32 %v264_v46, %v191_v41 }
 0x123   :  { %v1576_v47 = vmul.f32 -1.442695, %v266_v45  ;;  %v259_v50 = vpop.f32.mrb[0].mxu1 }
 0x124   :  { %v1577_v51 = vmul.f32 -1.442695, %v267_v49  ;;  %v1762_v52 = vpop.f32.mrb[1].mxu1  ;;  %v260_v62 = vadd.f32 %v259_v50, %v2860_v58  ;;  %v440_v50 = vld [vmem:[#allocation2 + $0x20] sm:$0xff] }
 0x125   :  { %2470 = vpow2.f32 %v1576_v47 }
 0x126   :  { %2472 = vpow2.f32 %v1577_v51 }
 0x12f   :  { %v2471_v54 = vpop.eup %2470 }
 0x130   :  { %v274_v56 = vadd.f32 1.0, %v2471_v54  ;;  %v2473_v60 = vpop.eup %2472 }
 0x131   :  { %v275_v61 = vadd.f32 1.0, %v2473_v60 }
 0x132   :  { %2474 = vrcp.f32 %v274_v56 }
 0x133   :  { %2476 = vrcp.f32 %v275_v61 }
 0x13c   :  { %v2475_v3 = vpop.eup %2474 }
 0x13d   :  { %v280_v7 = vmul.f32 %v2475_v3, %v260_v62  ;;  %v2477_v12 = vpop.eup %2476  ;;  %v441_v62 = vld [vmem:[#allocation2 + $0x28] sm:$0xff] }
 0x13e   :  { %v283_v14 = vsub.f32 1.0, %v2477_v12  ;;  %v285_v24 = vmul.f32 0.0, %v2477_v12 }
 0x13f   :  { %v281_v9 = vadd.f32 %v280_v7, %v265_v5 }
 0x141   :  { %2478 = vtanh.f32 %v281_v9 }
 0x14b   :  { %v2479_v18 = vpop.eup %2478 }
 0x14c   :  { %v284_v21 = vmul.f32 %v2479_v18, %v283_v14 }
 0x14e   :  { %v286_v26 = vadd.f32 %v285_v24, %v284_v21 }
 0x150   :  { %v2863_v27 = vsel %vm293_vm5, %v286_v26, 0.0  ;;  %2550 = vmatmul.mubr.msk.f32.vlgmr.msra.gmra.mrb[2].mxu0 %vm293_vm5, %v286_v26  ;;  %2551 = vmatmul.mubr.msk.f32.vlgmr.msra.gmra.mrb[2].mxu1 %vm293_vm5, %v286_v26 }
 0x151   :  { %295 = vst [vmem:[#allocation7] sm:$0xff] %v2863_v27  ;;  %2123 = vmatpush1.bf16.msra.mxu0 %v2722_v10  ;;  %2154 = vmatpush3.bf16.msra.mxu1 %v2739_v30 }
 0x152   :  { %2125 = vmatprep.subr.bf16.mxu0 %v2724_v11  ;;  %2155 = vmatprep.subr.bf16.mxu1 %v2652_v0 }
 0x153   :  { %539 = vmatprep.mubr.f32.mxu0 %v2653_v1  ;;  %1830 = vmatprep.mubr.msk.f32.mxu1 %vm2654_vm0, %v2653_v1 }
 0x155   :  { %2127 = vmatpush1.bf16.msra.mxu0 %v2728_v16  ;;  %2157 = vmatpush3.bf16.msra.mxu1 %v2748_v38 }
 0x156   :  { %2129 = vmatprep.subr.bf16.mxu0 %v2731_v17  ;;  %2158 = vmatprep.subr.bf16.mxu1 %v2652_v0 }
 0x159   :  { %2131 = vmatpush1.bf16.msra.mxu0 %v2734_v22  ;;  %2160 = vmatpush3.bf16.msra.mxu1 %v2763_v48 }
 0x15a   :  { %2133 = vmatprep.subr.bf16.mxu0 %v2737_v23  ;;  %2161 = vmatprep.subr.bf16.mxu1 %v2652_v0 }
 0x15d   :  { %2135 = vmatpush1.bf16.msra.mxu0 %v2742_v33  ;;  %2163 = vmatpush3.bf16.msra.mxu1 %v2777_v59 }
 0x15e   :  { %2137 = vmatprep.subr.bf16.mxu0 %v2745_v34  ;;  %2164 = vmatprep.subr.bf16.mxu1 %v2652_v0 }
 0x161   :  { %2139 = vmatpush1.bf16.msra.mxu0 %v2752_v42  ;;  %2166 = vmatpush3.bf16.msra.mxu1 %v2789_v8 }
 0x162   :  { %2141 = vmatprep.subr.bf16.mxu0 %v2760_v44  ;;  %2167 = vmatprep.subr.bf16.mxu1 %v2652_v0 }
 0x165   :  { %2143 = vmatpush1.bf16.msra.mxu0 %v2770_v53  ;;  %2169 = vmatpush3.bf16.msra.mxu1 %v2799_v15 }
 0x166   :  { %2145 = vmatprep.subr.bf16.mxu0 %v2774_v55  ;;  %2170 = vmatprep.subr.bf16.mxu1 %v2652_v0 }
 0x169   :  { %2147 = vmatpush1.bf16.msra.mxu0 %v2782_v63  ;;  %2172 = vmatpush3.bf16.msra.mxu1 %v2804_v20 }
 0x16a   :  { %2149 = vmatprep.subr.bf16.mxu0 %v2786_v4  ;;  %2173 = vmatprep.subr.bf16.mxu1 %v2652_v0 }
 0x16d   :  { %2151 = vmatpush1.bf16.msra.mxu0 %v2794_v13  ;;  %2175 = vmatpush3.bf16.msra.mxu1 %v2812_v25 }
 0x16e   :  { %2177 = vmatprep.subr.bf16.mxu0 %v2720_v6  ;;  %2208 = vmatprep.subr.bf16.mxu1 %v2652_v0 }
 0x223   :  { %v363_v37 = vpop.f32.mrb[2].mxu0  ;;  %v434_v40 = vpop.f32.mrb[2].mxu1 }
 0x224   :  { %v364_v41 = vadd.f32 %v363_v37, %v2854_v32  ;;  %v365_v45 = vpop.f32.mrb[3].mxu0  ;;  %v1797_v46 = vpop.f32.mrb[3].mxu1  ;;  %v435_v60 = vadd.f32 %v434_v40, %v2860_v58 }
 0x225   :  { %v366_v47 = vadd.f32 %v365_v45, %v2856_v35 }
 0x226   :  { %v442_v49 = vadd.f32 %v439_v39, %v364_v41  ;;  %v618_v41 = vld [vmem:[#allocation2 + $0x38] sm:$0xff] }
 0x227   :  { %v443_v52 = vadd.f32 %v440_v50, %v366_v47 }
 0x228   :  { %v1578_v51 = vmul.f32 -1.442695, %v442_v49 }
 0x229   :  { %v1579_v54 = vmul.f32 -1.442695, %v443_v52 }
 0x22a   :  { %2480 = vpow2.f32 %v1578_v51 }
 0x22b   :  { %2482 = vpow2.f32 %v1579_v54 }
 0x234   :  { %v2481_v43 = vpop.eup %2480 }
 0x235   :  { %v450_v56 = vadd.f32 1.0, %v2481_v43  ;;  %v2483_v2 = vpop.eup %2482 }
 0x236   :  { %v451_v57 = vadd.f32 1.0, %v2483_v2 }
 0x237   :  { %2484 = vrcp.f32 %v450_v56  ;;  %v619_v56 = vld [vmem:[#allocation2 + $0x40] sm:$0xff] }
 0x238   :  { %2486 = vrcp.f32 %v451_v57 }
 0x241   :  { %v2485_v61 = vpop.eup %2484 }
 0x242   :  { %v456_v3 = vmul.f32 %v2485_v61, %v435_v60  ;;  %v2487_v7 = vpop.eup %2486 }
 0x243   :  { %v459_v9 = vsub.f32 1.0, %v2487_v7  ;;  %v461_v18 = vmul.f32 %v2487_v7, %v2863_v27 }
 0x244   :  { %v457_v5 = vadd.f32 %v456_v3, %v441_v62  ;;  %v647_v3 = vpop.permute.xlu1 %646 }
 0x245   :  { %vm648_vm11 = vcmp.eq.s32.totalorder %v647_v3, 1 }
 0x246   :  { %2488 = vtanh.f32 %v457_v5 }
 0x250   :  { %v2489_v12 = vpop.eup %2488 }
 0x251   :  { %v460_v14 = vmul.f32 %v2489_v12, %v459_v9 }
 0x253   :  { %v462_v21 = vadd.f32 %v461_v18, %v460_v14 }
 0x255   :  { %v471_v24 = vsel %vm470_vm10, %v462_v21, 0.0  ;;  %v2914_v26 = vsel %vm470_vm10, %v462_v21, %v2863_v27 }
 0x256   :  { %473 = vst [vmem:[#allocation7 + $0x8] sm:$0xff] %v471_v24  ;;  %540 = vmatmul.mubr.f32.vlgmr.msra.gmra.mrb[4].mxu0 %v2914_v26  ;;  %1831 = vmatmul.mubr.f32.vlgmr.msra.gmra.mrb[4].mxu1 %v2914_v26 }
 0x257   :  { %2179 = vmatpush1.bf16.msra.mxu0 %v2722_v10  ;;  %2210 = vmatpush3.bf16.msra.mxu1 %v2739_v30 }
 0x258   :  { %2181 = vmatprep.subr.bf16.mxu0 %v2724_v11  ;;  %2211 = vmatprep.subr.bf16.mxu1 %v2652_v0 }
 0x259   :  { %717 = vmatprep.mubr.f32.mxu0 %v2653_v1  ;;  %1865 = vmatprep.mubr.msk.f32.mxu1 %vm2654_vm0, %v2653_v1 }
 0x25b   :  { %2183 = vmatpush1.bf16.msra.mxu0 %v2728_v16  ;;  %2213 = vmatpush3.bf16.msra.mxu1 %v2748_v38 }
 0x25c   :  { %2185 = vmatprep.subr.bf16.mxu0 %v2731_v17  ;;  %2214 = vmatprep.subr.bf16.mxu1 %v2652_v0 }
 0x25f   :  { %2187 = vmatpush1.bf16.msra.mxu0 %v2734_v22  ;;  %2216 = vmatpush3.bf16.msra.mxu1 %v2763_v48 }
 0x260   :  { %2189 = vmatprep.subr.bf16.mxu0 %v2737_v23  ;;  %2217 = vmatprep.subr.bf16.mxu1 %v2652_v0 }
 0x263   :  { %2191 = vmatpush1.bf16.msra.mxu0 %v2742_v33  ;;  %2219 = vmatpush3.bf16.msra.mxu1 %v2777_v59 }
 0x264   :  { %2193 = vmatprep.subr.bf16.mxu0 %v2745_v34  ;;  %2220 = vmatprep.subr.bf16.mxu1 %v2652_v0 }
 0x267   :  { %2195 = vmatpush1.bf16.msra.mxu0 %v2752_v42  ;;  %2222 = vmatpush3.bf16.msra.mxu1 %v2789_v8 }
 0x268   :  { %2197 = vmatprep.subr.bf16.mxu0 %v2760_v44  ;;  %2223 = vmatprep.subr.bf16.mxu1 %v2652_v0 }
 0x26b   :  { %2199 = vmatpush1.bf16.msra.mxu0 %v2770_v53  ;;  %2225 = vmatpush3.bf16.msra.mxu1 %v2799_v15 }
 0x26c   :  { %2201 = vmatprep.subr.bf16.mxu0 %v2774_v55  ;;  %2226 = vmatprep.subr.bf16.mxu1 %v2652_v0 }
 0x26f   :  { %2203 = vmatpush1.bf16.msra.mxu0 %v2782_v63  ;;  %2228 = vmatpush3.bf16.msra.mxu1 %v2804_v20 }
 0x270   :  { %2205 = vmatprep.subr.bf16.mxu0 %v2786_v4  ;;  %2229 = vmatprep.subr.bf16.mxu1 %v2652_v0 }
 0x273   :  { %2207 = vmatpush1.bf16.msra.mxu0 %v2794_v13  ;;  %2231 = vmatpush3.bf16.msra.mxu1 %v2812_v25 }
 0x274   :  { %2233 = vmatprep.subr.bf16.mxu0 %v2720_v6  ;;  %2264 = vmatprep.subr.bf16.mxu1 %v2652_v0 }
 0x329   :  { %v541_v27 = vpop.f32.mrb[4].mxu0  ;;  %v612_v29 = vpop.f32.mrb[4].mxu1 }
 0x32a   :  { %v542_v31 = vadd.f32 %v541_v27, %v2854_v32  ;;  %v543_v36 = vpop.f32.mrb[5].mxu0  ;;  %v1832_v37 = vpop.f32.mrb[5].mxu1  ;;  %v613_v54 = vadd.f32 %v612_v29, %v2860_v58 }
 0x32b   :  { %v544_v39 = vadd.f32 %v543_v36, %v2856_v35 }
 0x32c   :  { %v620_v40 = vadd.f32 %v617_v28, %v542_v31  ;;  %v796_v31 = vld [vmem:[#allocation2 + $0x50] sm:$0xff] }
 0x32d   :  { %v621_v46 = vadd.f32 %v618_v41, %v544_v39 }
 0x32e   :  { %v1580_v45 = vmul.f32 -1.442695, %v620_v40 }
 0x32f   :  { %v1581_v47 = vmul.f32 -1.442695, %v621_v46 }
 0x330   :  { %2490 = vpow2.f32 %v1580_v45 }
 0x331   :  { %2492 = vpow2.f32 %v1581_v47 }
 0x33a   :  { %v2491_v49 = vpop.eup %2490 }
 0x33b   :  { %v628_v50 = vadd.f32 1.0, %v2491_v49  ;;  %v2493_v51 = vpop.eup %2492 }
 0x33c   :  { %v629_v52 = vadd.f32 1.0, %v2493_v51 }
 0x33d   :  { %2494 = vrcp.f32 %v628_v50  ;;  %v797_v50 = vld [vmem:[#allocation2 + $0x58] sm:$0xff] }
 0x33e   :  { %2496 = vrcp.f32 %v629_v52 }
 0x347   :  { %v2495_v43 = vpop.eup %2494 }
 0x348   :  { %v634_v2 = vmul.f32 %v2495_v43, %v613_v54  ;;  %v2497_v60 = vpop.eup %2496 }
 0x349   :  { %v637_v61 = vsub.f32 1.0, %v2497_v60  ;;  %v639_v7 = vmul.f32 %v2497_v60, %v2914_v26  ;;  %v825_v60 = vpop.permute.xlu1 %824 }
 0x34a   :  { %v635_v57 = vadd.f32 %v634_v2, %v619_v56  ;;  %vm826_vm12 = vcmp.eq.s32.totalorder %v825_v60, 1  ;;  %v1151_v60 = vld [vmem:[#allocation2 + $0x78] sm:$0xff] }
 0x34c   :  { %2498 = vtanh.f32 %v635_v57 }
 0x356   :  { %v2499_v62 = vpop.eup %2498 }
 0x357   :  { %v638_v5 = vmul.f32 %v2499_v62, %v637_v61 }
 0x359   :  { %v640_v9 = vadd.f32 %v639_v7, %v638_v5  ;;  %v973_v7 = vld [vmem:[#allocation2 + $0x60] sm:$0xff] }
 0x35b   :  { %v649_v12 = vsel %vm648_vm11, %v640_v9, 0.0  ;;  %v2958_v14 = vsel %vm648_vm11, %v640_v9, %v2914_v26 }
 0x35c   :  { %651 = vst [vmem:[#allocation7 + $0x10] sm:$0xff] %v649_v12  ;;  %718 = vmatmul.mubr.f32.vlgmr.msra.gmra.mrb[6].mxu0 %v2958_v14  ;;  %1866 = vmatmul.mubr.f32.vlgmr.msra.gmra.mrb[6].mxu1 %v2958_v14 }
 0x35d   :  { %2235 = vmatpush1.bf16.msra.mxu0 %v2722_v10  ;;  %2266 = vmatpush3.bf16.msra.mxu1 %v2739_v30 }
 0x35e   :  { %2237 = vmatprep.subr.bf16.mxu0 %v2724_v11  ;;  %2267 = vmatprep.subr.bf16.mxu1 %v2652_v0 }
 0x35f   :  { %895 = vmatprep.mubr.f32.mxu0 %v2653_v1  ;;  %1900 = vmatprep.mubr.msk.f32.mxu1 %vm2654_vm0, %v2653_v1 }
 0x361   :  { %2239 = vmatpush1.bf16.msra.mxu0 %v2728_v16  ;;  %2269 = vmatpush3.bf16.msra.mxu1 %v2748_v38 }
 0x362   :  { %2241 = vmatprep.subr.bf16.mxu0 %v2731_v17  ;;  %2270 = vmatprep.subr.bf16.mxu1 %v2652_v0 }
 0x365   :  { %2243 = vmatpush1.bf16.msra.mxu0 %v2734_v22  ;;  %2272 = vmatpush3.bf16.msra.mxu1 %v2763_v48 }
 0x366   :  { %2245 = vmatprep.subr.bf16.mxu0 %v2737_v23  ;;  %2273 = vmatprep.subr.bf16.mxu1 %v2652_v0 }
 0x369   :  { %2247 = vmatpush1.bf16.msra.mxu0 %v2742_v33  ;;  %2275 = vmatpush3.bf16.msra.mxu1 %v2777_v59 }
 0x36a   :  { %2249 = vmatprep.subr.bf16.mxu0 %v2745_v34  ;;  %2276 = vmatprep.subr.bf16.mxu1 %v2652_v0 }
 0x36d   :  { %2251 = vmatpush1.bf16.msra.mxu0 %v2752_v42  ;;  %2278 = vmatpush3.bf16.msra.mxu1 %v2789_v8 }
 0x36e   :  { %2253 = vmatprep.subr.bf16.mxu0 %v2760_v44  ;;  %2279 = vmatprep.subr.bf16.mxu1 %v2652_v0 }
 0x371   :  { %2255 = vmatpush1.bf16.msra.mxu0 %v2770_v53  ;;  %2281 = vmatpush3.bf16.msra.mxu1 %v2799_v15 }
 0x372   :  { %2257 = vmatprep.subr.bf16.mxu0 %v2774_v55  ;;  %2282 = vmatprep.subr.bf16.mxu1 %v2652_v0 }
 0x375   :  { %2259 = vmatpush1.bf16.msra.mxu0 %v2782_v63  ;;  %2284 = vmatpush3.bf16.msra.mxu1 %v2804_v20 }
 0x376   :  { %2261 = vmatprep.subr.bf16.mxu0 %v2786_v4  ;;  %2285 = vmatprep.subr.bf16.mxu1 %v2652_v0 }
 0x379   :  { %2263 = vmatpush1.bf16.msra.mxu0 %v2794_v13  ;;  %2287 = vmatpush3.bf16.msra.mxu1 %v2812_v25 }
 0x37a   :  { %2289 = vmatprep.subr.bf16.mxu0 %v2720_v6  ;;  %2320 = vmatprep.subr.bf16.mxu1 %v2652_v0 }
 0x42f   :  { %v719_v18 = vpop.f32.mrb[6].mxu0  ;;  %v790_v21 = vpop.f32.mrb[6].mxu1 }
 0x430   :  { %v720_v24 = vadd.f32 %v719_v18, %v2854_v32  ;;  %v721_v26 = vpop.f32.mrb[7].mxu0  ;;  %v1867_v27 = vpop.f32.mrb[7].mxu1  ;;  %v791_v47 = vadd.f32 %v790_v21, %v2860_v58 }
 0x431   :  { %v722_v28 = vadd.f32 %v721_v26, %v2856_v35 }
 0x432   :  { %v798_v29 = vadd.f32 %v795_v19, %v720_v24  ;;  %v974_v24 = vld [vmem:[#allocation2 + $0x68] sm:$0xff] }
 0x433   :  { %v799_v37 = vadd.f32 %v796_v31, %v722_v28 }
 0x434   :  { %v1582_v36 = vmul.f32 -1.442695, %v798_v29 }
 0x435   :  { %v1583_v39 = vmul.f32 -1.442695, %v799_v37 }
 0x436   :  { %2500 = vpow2.f32 %v1582_v36 }
 0x437   :  { %2502 = vpow2.f32 %v1583_v39 }
 0x440   :  { %v2501_v40 = vpop.eup %2500 }
 0x441   :  { %v806_v41 = vadd.f32 1.0, %v2501_v40  ;;  %v2503_v45 = vpop.eup %2502 }
 0x442   :  { %v807_v46 = vadd.f32 1.0, %v2503_v45 }
 0x443   :  { %2504 = vrcp.f32 %v806_v41  ;;  %v975_v41 = vld [vmem:[#allocation2 + $0x70] sm:$0xff] }
 0x444   :  { %2506 = vrcp.f32 %v807_v46 }
 0x44d   :  { %v2505_v49 = vpop.eup %2504 }
 0x44e   :  { %v812_v51 = vmul.f32 %v2505_v49, %v791_v47  ;;  %v2507_v54 = vpop.eup %2506 }
 0x44f   :  { %v815_v43 = vsub.f32 1.0, %v2507_v54  ;;  %v817_v57 = vmul.f32 %v2507_v54, %v2958_v14  ;;  %v1003_v54 = vpop.permute.xlu0 %1002 }
 0x450   :  { %v813_v52 = vadd.f32 %v812_v51, %v797_v50  ;;  %vm1004_vm13 = vcmp.eq.s32.totalorder %v1003_v54, 1 }
 0x452   :  { %2508 = vtanh.f32 %v813_v52 }
 0x45c   :  { %v2509_v56 = vpop.eup %2508 }
 0x45d   :  { %v816_v2 = vmul.f32 %v2509_v56, %v815_v43 }
 0x45f   :  { %v818_v61 = vadd.f32 %v817_v57, %v816_v2 }
 0x461   :  { %v827_v62 = vsel %vm826_vm12, %v818_v61, 0.0  ;;  %v3002_v3 = vsel %vm826_vm12, %v818_v61, %v2958_v14 }
 0x462   :  { %829 = vst [vmem:[#allocation7 + $0x18] sm:$0xff] %v827_v62  ;;  %896 = vmatmul.mubr.f32.vlgmr.msra.gmra.mrb[8].mxu0 %v3002_v3  ;;  %1901 = vmatmul.mubr.f32.vlgmr.msra.gmra.mrb[8].mxu1 %v3002_v3 }
 0x463   :  { %2291 = vmatpush1.bf16.msra.mxu0 %v2722_v10  ;;  %2322 = vmatpush3.bf16.msra.mxu1 %v2739_v30 }
 0x464   :  { %2293 = vmatprep.subr.bf16.mxu0 %v2724_v11  ;;  %2323 = vmatprep.subr.bf16.mxu1 %v2652_v0 }
 0x465   :  { %1073 = vmatprep.mubr.f32.mxu0 %v2653_v1  ;;  %1935 = vmatprep.mubr.msk.f32.mxu1 %vm2654_vm0, %v2653_v1 }
 0x467   :  { %2295 = vmatpush1.bf16.msra.mxu0 %v2728_v16  ;;  %2325 = vmatpush3.bf16.msra.mxu1 %v2748_v38 }
 0x468   :  { %2297 = vmatprep.subr.bf16.mxu0 %v2731_v17  ;;  %2326 = vmatprep.subr.bf16.mxu1 %v2652_v0 }
 0x46b   :  { %2299 = vmatpush1.bf16.msra.mxu0 %v2734_v22  ;;  %2328 = vmatpush3.bf16.msra.mxu1 %v2763_v48 }
 0x46c   :  { %2301 = vmatprep.subr.bf16.mxu0 %v2737_v23  ;;  %2329 = vmatprep.subr.bf16.mxu1 %v2652_v0 }
 0x46f   :  { %2303 = vmatpush1.bf16.msra.mxu0 %v2742_v33  ;;  %2331 = vmatpush3.bf16.msra.mxu1 %v2777_v59 }
 0x470   :  { %2305 = vmatprep.subr.bf16.mxu0 %v2745_v34  ;;  %2332 = vmatprep.subr.bf16.mxu1 %v2652_v0 }
 0x473   :  { %2307 = vmatpush1.bf16.msra.mxu0 %v2752_v42  ;;  %2334 = vmatpush3.bf16.msra.mxu1 %v2789_v8 }
 0x474   :  { %2309 = vmatprep.subr.bf16.mxu0 %v2760_v44  ;;  %2335 = vmatprep.subr.bf16.mxu1 %v2652_v0 }
 0x477   :  { %2311 = vmatpush1.bf16.msra.mxu0 %v2770_v53  ;;  %2337 = vmatpush3.bf16.msra.mxu1 %v2799_v15 }
 0x478   :  { %2313 = vmatprep.subr.bf16.mxu0 %v2774_v55  ;;  %2338 = vmatprep.subr.bf16.mxu1 %v2652_v0 }
 0x47b   :  { %2315 = vmatpush1.bf16.msra.mxu0 %v2782_v63  ;;  %2340 = vmatpush3.bf16.msra.mxu1 %v2804_v20 }
 0x47c   :  { %2317 = vmatprep.subr.bf16.mxu0 %v2786_v4  ;;  %2341 = vmatprep.subr.bf16.mxu1 %v2652_v0 }
 0x47f   :  { %2319 = vmatpush1.bf16.msra.mxu0 %v2794_v13  ;;  %2343 = vmatpush3.bf16.msra.mxu1 %v2812_v25 }
 0x480   :  { %2345 = vmatprep.subr.bf16.mxu0 %v2720_v6  ;;  %2376 = vmatprep.subr.bf16.mxu1 %v2652_v0 }
 0x535   :  { %v897_v5 = vpop.f32.mrb[8].mxu0  ;;  %v968_v9 = vpop.f32.mrb[8].mxu1 }
 0x536   :  { %v898_v12 = vadd.f32 %v897_v5, %v2854_v32  ;;  %v899_v14 = vpop.f32.mrb[9].mxu0  ;;  %v1902_v18 = vpop.f32.mrb[9].mxu1  ;;  %v969_v39 = vadd.f32 %v968_v9, %v2860_v58 }
 0x537   :  { %v900_v19 = vadd.f32 %v899_v14, %v2856_v35 }
 0x538   :  { %v976_v21 = vadd.f32 %v973_v7, %v898_v12  ;;  %v1152_v12 = vld [vmem:[#allocation2 + $0x80] sm:$0xff] }
 0x539   :  { %v977_v27 = vadd.f32 %v974_v24, %v900_v19 }
 0x53a   :  { %v1584_v26 = vmul.f32 -1.442695, %v976_v21 }
 0x53b   :  { %v1585_v28 = vmul.f32 -1.442695, %v977_v27 }
 0x53c   :  { %2510 = vpow2.f32 %v1584_v26 }
 0x53d   :  { %2512 = vpow2.f32 %v1585_v28 }
 0x546   :  { %v2511_v29 = vpop.eup %2510 }
 0x547   :  { %v984_v31 = vadd.f32 1.0, %v2511_v29  ;;  %v2513_v36 = vpop.eup %2512  ;;  %v1153_v29 = vld [vmem:[#allocation2 + $0x88] sm:$0xff] }
 0x548   :  { %v985_v37 = vadd.f32 1.0, %v2513_v36 }
 0x549   :  { %2514 = vrcp.f32 %v984_v31 }
 0x54a   :  { %2516 = vrcp.f32 %v985_v37 }
 0x553   :  { %v2515_v40 = vpop.eup %2514 }
 0x554   :  { %v990_v45 = vmul.f32 %v2515_v40, %v969_v39  ;;  %v2517_v47 = vpop.eup %2516 }
 0x555   :  { %v993_v49 = vsub.f32 1.0, %v2517_v47  ;;  %v995_v52 = vmul.f32 %v2517_v47, %v3002_v3 }
 0x556   :  { %v991_v46 = vadd.f32 %v990_v45, %v975_v41 }
 0x558   :  { %2518 = vtanh.f32 %v991_v46  ;;  %v1181_v46 = vpop.permute.xlu1 %1180 }
 0x559   :  { %vm1182_vm14 = vcmp.eq.s32.totalorder %v1181_v46, 1 }
 0x562   :  { %v2519_v50 = vpop.eup %2518 }
 0x563   :  { %v994_v51 = vmul.f32 %v2519_v50, %v993_v49 }
 0x565   :  { %v996_v43 = vadd.f32 %v995_v52, %v994_v51 }
 0x567   :  { %v1005_v56 = vsel %vm1004_vm13, %v996_v43, 0.0  ;;  %v3046_v2 = vsel %vm1004_vm13, %v996_v43, %v3002_v3 }
 0x568   :  { %1007 = vst [vmem:[#allocation7 + $0x20] sm:$0xff] %v1005_v56  ;;  %1074 = vmatmul.mubr.f32.vlgmr.msra.gmra.mrb[10].mxu0 %v3046_v2  ;;  %1936 = vmatmul.mubr.f32.vlgmr.msra.gmra.mrb[10].mxu1 %v3046_v2 }
 0x569   :  { %2347 = vmatpush1.bf16.msra.mxu0 %v2722_v10  ;;  %2378 = vmatpush3.bf16.msra.mxu1 %v2739_v30 }
 0x56a   :  { %2349 = vmatprep.subr.bf16.mxu0 %v2724_v11  ;;  %2379 = vmatprep.subr.bf16.mxu1 %v2652_v0 }
 0x56b   :  { %1251 = vmatprep.mubr.f32.mxu0 %v2653_v1  ;;  %1970 = vmatprep.mubr.msk.f32.mxu1 %vm2654_vm0, %v2653_v1 }
 0x56d   :  { %2351 = vmatpush1.bf16.msra.mxu0 %v2728_v16  ;;  %2381 = vmatpush3.bf16.msra.mxu1 %v2748_v38 }
 0x56e   :  { %2353 = vmatprep.subr.bf16.mxu0 %v2731_v17  ;;  %2382 = vmatprep.subr.bf16.mxu1 %v2652_v0 }
 0x571   :  { %2355 = vmatpush1.bf16.msra.mxu0 %v2734_v22  ;;  %2384 = vmatpush3.bf16.msra.mxu1 %v2763_v48 }
 0x572   :  { %2357 = vmatprep.subr.bf16.mxu0 %v2737_v23  ;;  %2385 = vmatprep.subr.bf16.mxu1 %v2652_v0 }
 0x575   :  { %2359 = vmatpush1.bf16.msra.mxu0 %v2742_v33  ;;  %2387 = vmatpush3.bf16.msra.mxu1 %v2777_v59 }
 0x576   :  { %2361 = vmatprep.subr.bf16.mxu0 %v2745_v34  ;;  %2388 = vmatprep.subr.bf16.mxu1 %v2652_v0 }
 0x579   :  { %2363 = vmatpush1.bf16.msra.mxu0 %v2752_v42  ;;  %2390 = vmatpush3.bf16.msra.mxu1 %v2789_v8 }
 0x57a   :  { %2365 = vmatprep.subr.bf16.mxu0 %v2760_v44  ;;  %2391 = vmatprep.subr.bf16.mxu1 %v2652_v0 }
 0x57d   :  { %2367 = vmatpush1.bf16.msra.mxu0 %v2770_v53  ;;  %2393 = vmatpush3.bf16.msra.mxu1 %v2799_v15 }
 0x57e   :  { %2369 = vmatprep.subr.bf16.mxu0 %v2774_v55  ;;  %2394 = vmatprep.subr.bf16.mxu1 %v2652_v0 }
 0x581   :  { %2371 = vmatpush1.bf16.msra.mxu0 %v2782_v63  ;;  %2396 = vmatpush3.bf16.msra.mxu1 %v2804_v20 }
 0x582   :  { %2373 = vmatprep.subr.bf16.mxu0 %v2786_v4  ;;  %2397 = vmatprep.subr.bf16.mxu1 %v2652_v0 }
 0x585   :  { %2375 = vmatpush1.bf16.msra.mxu0 %v2794_v13  ;;  %2399 = vmatpush3.bf16.msra.mxu1 %v2812_v25 }
 0x586   :  { %2401 = vmatprep.subr.bf16.mxu0 %v2720_v6  ;;  %2432 = vmatprep.subr.bf16.mxu1 %v2652_v0 }
 0x63b   :  { %v1075_v57 = vpop.f32.mrb[10].mxu0  ;;  %v1146_v61 = vpop.f32.mrb[10].mxu1 }
 0x63c   :  { %v1076_v62 = vadd.f32 %v1075_v57, %v2854_v32  ;;  %v1077_v3 = vpop.f32.mrb[11].mxu0  ;;  %v1937_v5 = vpop.f32.mrb[11].mxu1  ;;  %v1147_v27 = vadd.f32 %v1146_v61, %v2860_v58  ;;  %v1507_v57 = vld [vmem:[#allocation2 + $0xa8] sm:$0xff] }
 0x63d   :  { %v1078_v7 = vadd.f32 %v1077_v3, %v2856_v35 }
 0x63e   :  { %v1154_v9 = vadd.f32 %v1151_v60, %v1076_v62 }
 0x63f   :  { %v1155_v18 = vadd.f32 %v1152_v12, %v1078_v7 }
 0x640   :  { %v1586_v14 = vmul.f32 -1.442695, %v1154_v9  ;;  %v1508_v9 = vld [vmem:[#allocation2 + $0xb0] sm:$0xff] }
 0x641   :  { %v1587_v19 = vmul.f32 -1.442695, %v1155_v18 }
 0x642   :  { %2520 = vpow2.f32 %v1586_v14 }
 0x643   :  { %2522 = vpow2.f32 %v1587_v19 }
 0x64c   :  { %v2521_v21 = vpop.eup %2520 }
 0x64d   :  { %v1162_v6 = vadd.f32 1.0, %v2521_v21  ;;  %v2523_v24 = vpop.eup %2522 }
 0x64e   :  { %v1163_v26 = vadd.f32 1.0, %v2523_v24 }
 0x64f   :  { %2524 = vrcp.f32 %v1162_v6 }
 0x650   :  { %2526 = vrcp.f32 %v1163_v26 }
 0x659   :  { %v2525_v28 = vpop.eup %2524 }
 0x65a   :  { %v1168_v31 = vmul.f32 %v2525_v28, %v1147_v27  ;;  %v2527_v37 = vpop.eup %2526 }
 0x65b   :  { %v1171_v39 = vsub.f32 1.0, %v2527_v37  ;;  %v1173_v45 = vmul.f32 %v2527_v37, %v3046_v2  ;;  %v1537_v37 = vpop.permute.xlu1 %1536 }
 0x65c   :  { %v1169_v36 = vadd.f32 %v1168_v31, %v1153_v29 }
 0x65e   :  { %2528 = vtanh.f32 %v1169_v36 }
 0x668   :  { %v2529_v40 = vpop.eup %2528 }
 0x669   :  { %v1172_v41 = vmul.f32 %v2529_v40, %v1171_v39 }
 0x66b   :  { %v1174_v47 = vadd.f32 %v1173_v45, %v1172_v41 }
 0x66d   :  { %v1183_v49 = vsel %vm1182_vm14, %v1174_v47, 0.0  ;;  %v3090_v50 = vsel %vm1182_vm14, %v1174_v47, %v3046_v2 }
 0x66e   :  { %1185 = vst [vmem:[#allocation7 + $0x28] sm:$0xff] %v1183_v49  ;;  %1252 = vmatmul.mubr.f32.vlgmr.msra.gmra.mrb[12].mxu0 %v3090_v50  ;;  %1971 = vmatmul.mubr.f32.vlgmr.msra.gmra.mrb[12].mxu1 %v3090_v50 }
 0x66f   :  { %2403 = vmatpush1.bf16.msra.mxu0 %v2722_v10  ;;  %2434 = vmatpush3.bf16.msra.mxu1 %v2739_v30  ;;  %v1329_v10 = vld [vmem:[#allocation2 + $0x90] sm:$0xff] }
 0x670   :  { %2405 = vmatprep.subr.bf16.mxu0 %v2724_v11  ;;  %2435 = vmatprep.subr.bf16.mxu1 %v2652_v0 }
 0x671   :  { %1429 = vmatprep.mubr.f32.mxu0 %v2653_v1  ;;  %2005 = vmatprep.mubr.msk.f32.mxu1 %vm2654_vm0, %v2653_v1  ;;  %vm1538_vm0 = vcmp.eq.s32.totalorder %v1537_v37, 1 }
 0x673   :  { %2407 = vmatpush1.bf16.msra.mxu0 %v2728_v16  ;;  %2437 = vmatpush3.bf16.msra.mxu1 %v2748_v38 }
 0x674   :  { %2409 = vmatprep.subr.bf16.mxu0 %v2731_v17  ;;  %2438 = vmatprep.subr.bf16.mxu1 %v2652_v0 }
 0x677   :  { %2411 = vmatpush1.bf16.msra.mxu0 %v2734_v22  ;;  %2440 = vmatpush3.bf16.msra.mxu1 %v2763_v48 }
 0x678   :  { %2413 = vmatprep.subr.bf16.mxu0 %v2737_v23  ;;  %2441 = vmatprep.subr.bf16.mxu1 %v2652_v0 }
 0x67b   :  { %2415 = vmatpush1.bf16.msra.mxu0 %v2742_v33  ;;  %2443 = vmatpush3.bf16.msra.mxu1 %v2777_v59  ;;  %v1330_v33 = vld [vmem:[#allocation2 + $0x98] sm:$0xff] }
 0x67c   :  { %2417 = vmatprep.subr.bf16.mxu0 %v2745_v34  ;;  %2444 = vmatprep.subr.bf16.mxu1 %v2652_v0 }
 0x67f   :  { %2419 = vmatpush1.bf16.msra.mxu0 %v2752_v42  ;;  %2446 = vmatpush3.bf16.msra.mxu1 %v2789_v8 }
 0x680   :  { %2421 = vmatprep.subr.bf16.mxu0 %v2760_v44  ;;  %2447 = vmatprep.subr.bf16.mxu1 %v2652_v0 }
 0x683   :  { %2423 = vmatpush1.bf16.msra.mxu0 %v2770_v53  ;;  %2449 = vmatpush3.bf16.msra.mxu1 %v2799_v15 }
 0x684   :  { %2425 = vmatprep.subr.bf16.mxu0 %v2774_v55  ;;  %2450 = vmatprep.subr.bf16.mxu1 %v2652_v0 }
 0x687   :  { %2427 = vmatpush1.bf16.msra.mxu0 %v2782_v63  ;;  %2452 = vmatpush3.bf16.msra.mxu1 %v2804_v20  ;;  %v1331_v63 = vld [vmem:[#allocation2 + $0xa0] sm:$0xff] }
 0x688   :  { %2429 = vmatprep.subr.bf16.mxu0 %v2786_v4  ;;  %2453 = vmatprep.subr.bf16.mxu1 %v2652_v0 }
 0x68b   :  { %2431 = vmatpush1.bf16.msra.mxu0 %v2794_v13  ;;  %2455 = vmatpush3.bf16.msra.mxu1 %v2812_v25  ;;  %v1359_v25 = vpop.permute.xlu0 %1358 }
 0x68c   :  { %vm1360_vm15 = vcmp.eq.s32.totalorder %v1359_v25, 1 }
 0x741   :  { %v1253_v1 = vpop.f32.mrb[12].mxu0  ;;  %v1324_v11 = vpop.f32.mrb[12].mxu1 }
 0x742   :  { %v1254_v16 = vadd.f32 %v1253_v1, %v2854_v32  ;;  %v1255_v17 = vpop.f32.mrb[13].mxu0  ;;  %v1972_v22 = vpop.f32.mrb[13].mxu1  ;;  %v1325_v55 = vadd.f32 %v1324_v11, %v2860_v58 }
 0x743   :  { %v1256_v23 = vadd.f32 %v1255_v17, %v2856_v35 }
 0x744   :  { %v1332_v30 = vadd.f32 %v1329_v10, %v1254_v16 }
 0x745   :  { %v1333_v38 = vadd.f32 %v1330_v33, %v1256_v23 }
 0x746   :  { %v1588_v34 = vmul.f32 -1.442695, %v1332_v30 }
 0x747   :  { %v1589_v42 = vmul.f32 -1.442695, %v1333_v38 }
 0x748   :  { %2530 = vpow2.f32 %v1588_v34 }
 0x749   :  { %2532 = vpow2.f32 %v1589_v42 }
 0x752   :  { %v2531_v0 = vpop.eup %2530 }
 0x753   :  { %v1340_v44 = vadd.f32 1.0, %v2531_v0  ;;  %v2533_v48 = vpop.eup %2532 }
 0x754   :  { %v1341_v53 = vadd.f32 1.0, %v2533_v48 }
 0x755   :  { %2534 = vrcp.f32 %v1340_v44 }
 0x756   :  { %2536 = vrcp.f32 %v1341_v53 }
 0x75f   :  { %v2535_v59 = vpop.eup %2534 }
 0x760   :  { %v1346_v4 = vmul.f32 %v2535_v59, %v1325_v55  ;;  %v2537_v13 = vpop.eup %2536 }
 0x761   :  { %v1349_v15 = vsub.f32 1.0, %v2537_v13  ;;  %v1351_v52 = vmul.f32 %v2537_v13, %v3090_v50 }
 0x762   :  { %v1347_v8 = vadd.f32 %v1346_v4, %v1331_v63 }
 0x764   :  { %2538 = vtanh.f32 %v1347_v8 }
 0x76e   :  { %v2539_v20 = vpop.eup %2538 }
 0x76f   :  { %v1350_v51 = vmul.f32 %v2539_v20, %v1349_v15 }
 0x771   :  { %v1352_v54 = vadd.f32 %v1351_v52, %v1350_v51 }
 0x773   :  { %v1361_v43 = vsel %vm1360_vm15, %v1352_v54, 0.0  ;;  %v1364_v56 = vsel %vm1360_vm15, %v1352_v54, %v3090_v50 }
 0x774   :  { %1363 = vst [vmem:[#allocation7 + $0x30] sm:$0xff] %v1361_v43  ;;  %1430 = vmatmul.mubr.f32.vlgmr.msra.gmra.mrb[14].mxu0 %v1364_v56  ;;  %2006 = vmatmul.mubr.f32.vlgmr.msra.gmra.mrb[14].mxu1 %v1364_v56 }
 0x847   :  { %v1431_v2 = vpop.f32.mrb[14].mxu0  ;;  %v1502_v60 = vpop.f32.mrb[14].mxu1 }
 0x848   :  { %v1432_v61 = vadd.f32 %v1431_v2, %v2854_v32  ;;  %v1433_v62 = vpop.f32.mrb[15].mxu0  ;;  %v2007_v3 = vpop.f32.mrb[15].mxu1  ;;  %v1503_v26 = vadd.f32 %v1502_v60, %v2860_v58  ;;  %v1509_v32 = vld [vmem:[#allocation2 + $0xb8] sm:$0xff] }
 0x849   :  { %v1434_v5 = vadd.f32 %v1433_v62, %v2856_v35 }
 0x84a   :  { %v1510_v7 = vadd.f32 %v1507_v57, %v1432_v61 }
 0x84b   :  { %v1511_v14 = vadd.f32 %v1508_v9, %v1434_v5 }
 0x84c   :  { %v1590_v12 = vmul.f32 -1.442695, %v1510_v7 }
 0x84d   :  { %v1591_v18 = vmul.f32 -1.442695, %v1511_v14 }
 0x84e   :  { %2540 = vpow2.f32 %v1590_v12 }
 0x84f   :  { %2542 = vpow2.f32 %v1591_v18 }
 0x858   :  { %v2541_v19 = vpop.eup %2540 }
 0x859   :  { %v1518_v21 = vadd.f32 1.0, %v2541_v19  ;;  %v2543_v6 = vpop.eup %2542 }
 0x85a   :  { %v1519_v24 = vadd.f32 1.0, %v2543_v6 }
 0x85b   :  { %2544 = vrcp.f32 %v1518_v21 }
 0x85c   :  { %2546 = vrcp.f32 %v1519_v24 }
 0x865   :  { %v2545_v27 = vpop.eup %2544 }
 0x866   :  { %v1524_v28 = vmul.f32 %v2545_v27, %v1503_v26  ;;  %v2547_v35 = vpop.eup %2546 }
 0x867   :  { %v1527_v31 = vsub.f32 1.0, %v2547_v35  ;;  %v1529_v40 = vmul.f32 %v2547_v35, %v1364_v56 }
 0x868   :  { %v1525_v29 = vadd.f32 %v1524_v28, %v1509_v32 }
 0x86a   :  { %2548 = vtanh.f32 %v1525_v29 }
 0x874   :  { %v2549_v36 = vpop.eup %2548 }
 0x875   :  { %v1528_v39 = vmul.f32 %v2549_v36, %v1527_v31 }
 0x877   :  { %v1530_v41 = vadd.f32 %v1529_v40, %v1528_v39 }
 0x879   :  { %v1539_v58 = vsel %vm1538_vm0, %v1530_v41, 0.0  ;;  %v1542_v45 = vsel %vm1538_vm0, %v1530_v41, %v1364_v56 }
 0x87a   :  { %1541 = vst [vmem:[#allocation7 + $0x38] sm:$0xff] %v1539_v58  ;;  %1543 = vst [vmem:[#allocation8] sm:$0xff] %v1542_v45 }
 0x87b   :  { %2607 = shalt.err (!%p2604_p6)
}
 0x87c   :  { %s2608_s26 = scalar_lea.hbm %s3170_s4, 1024 }
 0x87d   :  { %p2609_p7 = scmp.ne.s32.totalorder %s3170_s4, %s2608_s26  ;;  %p2612_p8 = scmp.lt.u32.totalorder %s2608_s26, %s3170_s4 }
 0x87f   :  { %p2614_p9 = pnand %p2612_p8, %p2609_p7 }
 0x881   :  { %2617 = shalt.err (!%p2614_p9)
}
 0x882   :  { %s2658_s6 = smov 128   ;;  %s2659_s7 = smov 8  }
 0x883   :  { %1555 = dma.vmem_to_hbm [thread:$0]  %s1550_s20, 1024, %s3170_s4, [#allocation4], %s2658_s6, %s2658_s6, %s2659_s7  }
 0x884   :  { %s2618_s10 = scalar_lea.vmem %s3135_s22, 128  ;;  %p2623_p11 = scmp.lt.s32.totalorder %s3135_s22, %s3135_s22 }
 0x885   :  { %p2619_p10 = scmp.ne.s32.totalorder %s3135_s22, %s2618_s10  ;;  %p2624_p12 = scmp.lt.s32.totalorder %s2618_s10, %s2618_s10 }
 0x887   :  { %p2625_p13 = por %p2624_p12, %p2623_p11 }
 0x889   :  { %p2626_p0 = pnand %p2625_p13, %p2619_p10 }
 0x88b   :  { %2629 = shalt.err (!%p2626_p0)
}
 0x88c   :  { %s2630_s13 = scalar_lea.hbm %s3171_s5, 128 }
 0x88d   :  { %p2631_p1 = scmp.ne.s32.totalorder %s3171_s5, %s2630_s13  ;;  %p2634_p2 = scmp.lt.u32.totalorder %s2630_s13, %s3171_s5 }
 0x88f   :  { %p2636_p3 = pnand %p2634_p2, %p2631_p1 }
 0x891   :  { %2639 = shalt.err (!%p2636_p3)
}
 0x892   :  { %1565 = dma.vmem_to_hbm [thread:$0]  %s3135_s22, 128, %s3171_s5, [#allocation9]  }
 0x893   :  { %2644 = dma.done.wait [#allocation4], 1024  }
 0x894   :  { %2645 = vsyncadd [#allocation4], 4294966272 }
 0x895   :  { %2646 = dma.done.wait [#allocation9], 128  }
 0x896   :  { %2647 = vsyncadd [#allocation9], 4294967168 }
 0x897   :  { %1572 = vsyncpa [#allocation3], 1 }
 0x898   :  { %1573 = vsyncpa [#allocation6], 1 }
 0x899   :  { %1574 = vsyncpa [#allocation4], 1 }
 0x89a   :  { %1575 = vsyncpa [#allocation9], 1 }

</bundles_post_ra>
